<compile_context>
chip_gen: v6e
topology: v6e:2x2x1
jax: 0.10.0
libtpu: 0.0.40
codegen_flags: <defaults>
</compile_context>

<pallas_src>
import jax
import jax.numpy as jnp
import numpy as np
from jax.experimental import pallas as pl
from jax.experimental.pallas import tpu as pltpu


def _banded_weights(w, W):
    """(Cout, Cin, 3, 3) OIHW conv weights -> (3, (W+2)*Cin, (W+2)*Cout) banded matrices.

    For row tap ky:  conv[row, c*Cout+co] += (x_slab[row-1+ky, :] @ B[ky])[c*Cout+co],
    i.e. the 3 column taps and Cin are K-fused inside the band; output columns 0 and
    W+1 (the padding ring) get all-zero weight columns.
    """
    Cout, Cin, _, _ = w.shape
    Wp = W + 2
    ky, kx, c, ci, co = np.meshgrid(np.arange(3), np.arange(3), np.arange(1, W + 1),
                                    np.arange(Cin), np.arange(Cout), indexing="ij")
    vals = w[co, ci, ky, kx].astype(jnp.float32)
    return (jnp.zeros((3, Wp * Cin, Wp * Cout), jnp.float32)
            .at[ky, (c - 1 + kx) * Cin + ci, c * Cout + co].set(vals))


def downsample_forward(x_nchw, params):
    """Returns (pooled, pre) in NCHW, matching Downsample.forward (training-mode BN)."""
    w1, b1, g1, be1, w2, b2, g2, be2 = params
    N, Cin, H, W = x_nchw.shape
    Cout = w1.shape[0]
    Hp, Wp = H + 2, W + 2
    R = N * Hp                        # slab rows (sublanes)
    Lin, Lmid = Wp * Cin, Wp * Cout   # slab lanes
    Hh, Wh = H // 2, W // 2
    PR = 8                            # 8-aligned row halo for the conv row taps
    eps = 1e-5
    inv_count = 1.0 / (N * H * W)

    # ---- lane-dense input slab: NCHW -> zero-padded NHWC -> (N*(H+2), (W+2)*Cin) ----
    x_nhwc = jnp.transpose(x_nchw, (0, 2, 3, 1)).astype(jnp.float32)
    x_pad = jnp.pad(x_nhwc, ((0, 0), (1, 1), (1, 1), (0, 0)))
    x_slab = jnp.pad(x_pad.reshape(R, Lin), ((PR, PR), (0, 0)))

    # validity mask over the slab: 1 at interior pixels, 0 on the per-image padding ring
    row_valid = (np.arange(R) % Hp >= 1) & (np.arange(R) % Hp <= H)
    col_valid = (np.arange(Lmid) // Cout >= 1) & (np.arange(Lmid) // Cout <= W)
    mask = jnp.asarray((row_valid[:, None] & col_valid[None, :]).astype(np.float32))

    # channel-group reduce+broadcast matrix (lane i, j share a channel iff i%Cout==j%Cout)
    ch = np.arange(Lmid) % Cout
    gmat = jnp.asarray((ch[:, None] == ch[None, :]).astype(np.float32))

    # banded conv weights; bias/gamma/beta tiled across lanes, stacked (3, Lmid) per conv
    B1 = _banded_weights(w1, W)
    B2 = _banded_weights(w2, W)
    p1 = jnp.stack([jnp.tile(b1, Wp), jnp.tile(g1, Wp), jnp.tile(be1, Wp)]).astype(jnp.float32)
    p2 = jnp.stack([jnp.tile(b2, Wp), jnp.tile(g2, Wp), jnp.tile(be2, Wp)]).astype(jnp.float32)

    def kernel(x_ref, mask_ref, g_ref, b1_ref, p1_ref, b2_ref, p2_ref,
               y2_ref, pool_ref, y1_ref):
        mask_v = mask_ref[...]

        def conv3x3(src_ref, base, b_ref):
            # 3 row-tap matmuls; column taps + channels are K-fused in the banded weight.
            # TODO(synk): on v5e/v6e cast LHS/band to bf16 (f32 accumulate) at real sizes.
            acc = jnp.dot(src_ref[pl.ds(base - 1, R), :], b_ref[0],
                          preferred_element_type=jnp.float32)
            acc = acc + jnp.dot(src_ref[pl.ds(base, R), :], b_ref[1],
                                preferred_element_type=jnp.float32)
            acc = acc + jnp.dot(src_ref[pl.ds(base + 1, R), :], b_ref[2],
                                preferred_element_type=jnp.float32)
            return acc

        def ch_stat(v):
            # per-channel sum broadcast back to every lane of that channel:
            # cross-lane reduction on the MXU, tiny 36-row sublane reduce on the XLU.
            return jnp.sum(jnp.dot(v, g_ref[...], preferred_element_type=jnp.float32),
                           axis=0, keepdims=True) * inv_count

        def bn_relu(z, p_ref):
            p = p_ref[...]                          # (3, Lmid): bias / gamma / beta
            z = z + p[0:1, :]
            mean = ch_stat(z * mask_v)              # two-pass masked batch statistics
            d = (z - mean) * mask_v
            var = ch_stat(d * d)
            y = (z - mean) * jax.lax.rsqrt(var + eps) * p[1:2, :] + p[2:3, :]
            return jnp.maximum(y, 0.0)

        # ---- DoubleConv stage 1 ----
        y1 = bn_relu(conv3x3(x_ref, PR, b1_ref), p1_ref)
        # zero only the row halo; the mask re-zeroes the per-image padding ring for conv2
        y1_ref[pl.ds(0, PR), :] = jnp.zeros((PR, Lmid), jnp.float32)
        y1_ref[pl.ds(PR + R, PR), :] = jnp.zeros((PR, Lmid), jnp.float32)
        y1_ref[pl.ds(PR, R), :] = y1 * mask_v

        # ---- DoubleConv stage 2 (this is `pre`; wrapper trims the padding ring) ----
        y2 = bn_relu(conv3x3(y1_ref, PR, b2_ref), p2_ref)
        y2_ref[...] = y2

        # ---- MaxPool2d(2,2): full-width 2x2 max; stride-2 subsample done in wrapper ----
        cm = jnp.maximum(y2[:, :Lmid - Cout], y2[:, Cout:])    # col c vs c+1
        pool_ref[...] = jnp.maximum(cm[:R - 1, :], cm[1:, :])  # row r vs r+1

    vmem = pl.BlockSpec(memory_space=pltpu.MemorySpace.VMEM)
    # TODO(synk): beyond VMEM residency (real UNet shapes), tile rows with a BlockSpec grid
    # (>=512-row tiles, "parallel" row axis to use v7x's 2 TensorCores) and switch BN to
    # cross-tile partial sum/sum-sq + finalize; size tiles for v7x's 64 MiB physical VMEM.
    y2_slab, pool_slab = pl.pallas_call(
        kernel,
        out_shape=(jax.ShapeDtypeStruct((R, Lmid), jnp.float32),
                   jax.ShapeDtypeStruct((R - 1, Lmid - Cout), jnp.float32)),
        in_specs=[vmem] * 7,
        out_specs=(vmem, vmem),
        scratch_shapes=[pltpu.VMEM((R + 2 * PR, Lmid), jnp.float32)],
        compiler_params=pltpu.CompilerParams(vmem_limit_bytes=32 * 1024 * 1024),
    )(x_slab, mask, gmat, B1, p1, B2, p2)

    # `pre`: trim the padding ring, back to NCHW (free XLA layout plumbing).
    pre_nhwc = y2_slab.reshape(N, Hp, Wp, Cout)[:, 1:H + 1, 1:W + 1, :]
    pre = jnp.transpose(pre_nhwc, (0, 3, 1, 2))

    # pooled: stride-2 subsample of the in-kernel 2x2-max slab, back to NCHW.
    pm = pool_slab.reshape(R - 1, Wp - 1, Cout)
    rows = (np.arange(N)[:, None] * Hp + 1 + 2 * np.arange(Hh)[None, :]).reshape(-1)
    pooled_nhwc = pm[rows][:, 1::2, :].reshape(N, Hh, Wh, Cout)
    pooled = jnp.transpose(pooled_nhwc, (0, 3, 1, 2))
    return pooled, pre


def _reference(x, params):
    """Pure-JAX reference with PyTorch (NCHW) semantics."""
    w1, b1, g1, be1, w2, b2, g2, be2 = params

    def conv(x, w, b):
        y = jax.lax.conv_general_dilated(
            x, w, window_strides=(1, 1), padding=((1, 1), (1, 1)),
            dimension_numbers=('NCHW', 'OIHW', 'NCHW'))
        return y + b[None, :, None, None]

    def bn_relu(x, g, be):
        mean = jnp.mean(x, axis=(0, 2, 3), keepdims=True)
        var = jnp.mean((x - mean) ** 2, axis=(0, 2, 3), keepdims=True)
        y = (x - mean) * jax.lax.rsqrt(var + 1e-5) \
            * g[None, :, None, None] + be[None, :, None, None]
        return jnp.maximum(y, 0.0)

    pre = bn_relu(conv(bn_relu(conv(x, w1, b1), g1, be1), w2, b2), g2, be2)
    N, C, H, W = pre.shape
    pooled = pre.reshape(N, C, H // 2, 2, W // 2, 2).max(axis=(3, 5))
    return pooled, pre


if __name__ == "__main__":
    N, Cin, Cout, H, W = 2, 4, 8, 16, 16
    keys = jax.random.split(jax.random.PRNGKey(0), 9)

    x = jax.random.normal(keys[0], (N, Cin, H, W), jnp.float32)
    w1 = 0.2 * jax.random.normal(keys[1], (Cout, Cin, 3, 3), jnp.float32)
    b1 = 0.1 * jax.random.normal(keys[2], (Cout,), jnp.float32)
    g1 = 1.0 + 0.1 * jax.random.normal(keys[3], (Cout,), jnp.float32)
    be1 = 0.1 * jax.random.normal(keys[4], (Cout,), jnp.float32)
    w2 = 0.2 * jax.random.normal(keys[5], (Cout, Cout, 3, 3), jnp.float32)
    b2 = 0.1 * jax.random.normal(keys[6], (Cout,), jnp.float32)
    g2 = 1.0 + 0.1 * jax.random.normal(keys[7], (Cout,), jnp.float32)
    be2 = 0.1 * jax.random.normal(keys[8], (Cout,), jnp.float32)
    params = (w1, b1, g1, be1, w2, b2, g2, be2)

    pooled, pre = jax.block_until_ready(jax.jit(downsample_forward)(x, params))

    pooled_ref, pre_ref = _reference(x, params)
    np.testing.assert_allclose(np.asarray(pre), np.asarray(pre_ref),
                               rtol=5e-4, atol=5e-4)
    np.testing.assert_allclose(np.asarray(pooled), np.asarray(pooled_ref),
                               rtol=5e-4, atol=5e-4)
    print("KERNEL_OK")
</pallas_src>

<mosaic_0001>
module attributes {stable_mosaic.version = 11 : i64} {
  func.func @kernel(%arg0: memref<52x72xf32, #tpu.memory_space<vmem>>, %arg1: memref<36x144xf32, #tpu.memory_space<vmem>>, %arg2: memref<144x144xf32, #tpu.memory_space<vmem>>, %arg3: memref<3x72x144xf32, #tpu.memory_space<vmem>>, %arg4: memref<3x144xf32, #tpu.memory_space<vmem>>, %arg5: memref<3x144x144xf32, #tpu.memory_space<vmem>>, %arg6: memref<3x144xf32, #tpu.memory_space<vmem>>, %arg7: memref<36x144xf32, #tpu.memory_space<vmem>>, %arg8: memref<35x136xf32, #tpu.memory_space<vmem>>, %arg9: memref<52x144xf32, #tpu.memory_space<vmem>>) attributes {dimension_semantics = [], scalar_prefetch = 0 : i64, scratch_operands = 1 : i64, tpu.core_type = #tpu.core_type<tc>} {
    %c0 = arith.constant 0 : index
    %c0_0 = arith.constant 0 : index
    %0 = vector.load %arg1[%c0, %c0_0] : memref<36x144xf32, #tpu.memory_space<vmem>>, vector<36x144xf32>
    %c7 = arith.constant 7 : index
    %c0_1 = arith.constant 0 : index
    %1 = vector.load %arg0[%c7, %c0_1] : memref<52x72xf32, #tpu.memory_space<vmem>>, vector<36x72xf32>
    %c0_2 = arith.constant 0 : index
    %c0_3 = arith.constant 0 : index
    %c0_4 = arith.constant 0 : index
    %2 = vector.load %arg3[%c0_2, %c0_3, %c0_4] : memref<3x72x144xf32, #tpu.memory_space<vmem>>, vector<1x72x144xf32>
    %3 = vector.shape_cast %2 : vector<1x72x144xf32> to vector<72x144xf32>
    %cst = arith.constant dense<0.000000e+00> : vector<36x144xf32>
    %4 = tpu.matmul %1, %3, %cst {dimension_numbers = #tpu.dot_dimension_numbers<[1], [0], [0], [1], [0, 0, 1, 1], [], []>} : vector<36x72xf32>, vector<72x144xf32>, vector<36x144xf32> -> vector<36x144xf32>
    %c8 = arith.constant 8 : index
    %c0_5 = arith.constant 0 : index
    %5 = vector.load %arg0[%c8, %c0_5] : memref<52x72xf32, #tpu.memory_space<vmem>>, vector<36x72xf32>
    %c1 = arith.constant 1 : index
    %c0_6 = arith.constant 0 : index
    %c0_7 = arith.constant 0 : index
    %6 = vector.load %arg3[%c1, %c0_6, %c0_7] : memref<3x72x144xf32, #tpu.memory_space<vmem>>, vector<1x72x144xf32>
    %7 = vector.shape_cast %6 : vector<1x72x144xf32> to vector<72x144xf32>
    %cst_8 = arith.constant dense<0.000000e+00> : vector<36x144xf32>
    %8 = tpu.matmul %5, %7, %cst_8 {dimension_numbers = #tpu.dot_dimension_numbers<[1], [0], [0], [1], [0, 0, 1, 1], [], []>} : vector<36x72xf32>, vector<72x144xf32>, vector<36x144xf32> -> vector<36x144xf32>
    %9 = arith.addf %4, %8 : vector<36x144xf32>
    %c9 = arith.constant 9 : index
    %c0_9 = arith.constant 0 : index
    %10 = vector.load %arg0[%c9, %c0_9] : memref<52x72xf32, #tpu.memory_space<vmem>>, vector<36x72xf32>
    %c2 = arith.constant 2 : index
    %c0_10 = arith.constant 0 : index
    %c0_11 = arith.constant 0 : index
    %11 = vector.load %arg3[%c2, %c0_10, %c0_11] : memref<3x72x144xf32, #tpu.memory_space<vmem>>, vector<1x72x144xf32>
    %12 = vector.shape_cast %11 : vector<1x72x144xf32> to vector<72x144xf32>
    %cst_12 = arith.constant dense<0.000000e+00> : vector<36x144xf32>
    %13 = tpu.matmul %10, %12, %cst_12 {dimension_numbers = #tpu.dot_dimension_numbers<[1], [0], [0], [1], [0, 0, 1, 1], [], []>} : vector<36x72xf32>, vector<72x144xf32>, vector<36x144xf32> -> vector<36x144xf32>
    %14 = arith.addf %9, %13 : vector<36x144xf32>
    %c0_13 = arith.constant 0 : index
    %c0_14 = arith.constant 0 : index
    %15 = vector.load %arg4[%c0_13, %c0_14] : memref<3x144xf32, #tpu.memory_space<vmem>>, vector<3x144xf32>
    %16 = vector.extract_strided_slice %15 {offsets = [0, 0], sizes = [1, 144], strides = [1, 1]} : vector<3x144xf32> to vector<1x144xf32>
    %17 = vector.broadcast %16 : vector<1x144xf32> to vector<36x144xf32>
    %18 = arith.addf %14, %17 : vector<36x144xf32>
    %19 = arith.mulf %18, %0 : vector<36x144xf32>
    %c0_15 = arith.constant 0 : index
    %c0_16 = arith.constant 0 : index
    %20 = vector.load %arg2[%c0_15, %c0_16] : memref<144x144xf32, #tpu.memory_space<vmem>>, vector<144x144xf32>
    %cst_17 = arith.constant dense<0.000000e+00> : vector<36x144xf32>
    %21 = tpu.matmul %19, %20, %cst_17 {dimension_numbers = #tpu.dot_dimension_numbers<[1], [0], [0], [1], [0, 0, 1, 1], [], []>} : vector<36x144xf32>, vector<144x144xf32>, vector<36x144xf32> -> vector<36x144xf32>
    %cst_18 = arith.constant dense<0.000000e+00> : vector<144xf32>
    %22 = vector.multi_reduction <add>, %21, %cst_18 [0] : vector<36x144xf32> to vector<144xf32>
    %23 = vector.shape_cast %22 : vector<144xf32> to vector<1x144xf32>
    %cst_19 = arith.constant 0.001953125 : f32
    %24 = vector.broadcast %cst_19 : f32 to vector<1x144xf32>
    %25 = arith.mulf %23, %24 : vector<1x144xf32>
    %26 = vector.broadcast %25 : vector<1x144xf32> to vector<36x144xf32>
    %27 = arith.subf %18, %26 : vector<36x144xf32>
    %28 = arith.mulf %27, %0 : vector<36x144xf32>
    %29 = arith.mulf %28, %28 : vector<36x144xf32>
    %c0_20 = arith.constant 0 : index
    %c0_21 = arith.constant 0 : index
    %30 = vector.load %arg2[%c0_20, %c0_21] : memref<144x144xf32, #tpu.memory_space<vmem>>, vector<144x144xf32>
    %cst_22 = arith.constant dense<0.000000e+00> : vector<36x144xf32>
    %31 = tpu.matmul %29, %30, %cst_22 {dimension_numbers = #tpu.dot_dimension_numbers<[1], [0], [0], [1], [0, 0, 1, 1], [], []>} : vector<36x144xf32>, vector<144x144xf32>, vector<36x144xf32> -> vector<36x144xf32>
    %cst_23 = arith.constant dense<0.000000e+00> : vector<144xf32>
    %32 = vector.multi_reduction <add>, %31, %cst_23 [0] : vector<36x144xf32> to vector<144xf32>
    %33 = vector.shape_cast %32 : vector<144xf32> to vector<1x144xf32>
    %cst_24 = arith.constant 0.001953125 : f32
    %34 = vector.broadcast %cst_24 : f32 to vector<1x144xf32>
    %35 = arith.mulf %33, %34 : vector<1x144xf32>
    %36 = vector.broadcast %25 : vector<1x144xf32> to vector<36x144xf32>
    %37 = arith.subf %18, %36 : vector<36x144xf32>
    %cst_25 = arith.constant 9.99999974E-6 : f32
    %38 = vector.broadcast %cst_25 : f32 to vector<1x144xf32>
    %39 = arith.addf %35, %38 : vector<1x144xf32>
    %40 = math.rsqrt %39 : vector<1x144xf32>
    %41 = vector.broadcast %40 : vector<1x144xf32> to vector<36x144xf32>
    %42 = arith.mulf %37, %41 : vector<36x144xf32>
    %43 = vector.extract_strided_slice %15 {offsets = [1, 0], sizes = [1, 144], strides = [1, 1]} : vector<3x144xf32> to vector<1x144xf32>
    %44 = vector.broadcast %43 : vector<1x144xf32> to vector<36x144xf32>
    %45 = arith.mulf %42, %44 : vector<36x144xf32>
    %46 = vector.extract_strided_slice %15 {offsets = [2, 0], sizes = [1, 144], strides = [1, 1]} : vector<3x144xf32> to vector<1x144xf32>
    %47 = vector.broadcast %46 : vector<1x144xf32> to vector<36x144xf32>
    %48 = arith.addf %45, %47 : vector<36x144xf32>
    %cst_26 = arith.constant 0.000000e+00 : f32
    %49 = vector.broadcast %cst_26 : f32 to vector<36x144xf32>
    %50 = arith.maximumf %48, %49 : vector<36x144xf32>
    %cst_27 = arith.constant 0.000000e+00 : f32
    %51 = vector.broadcast %cst_27 : f32 to vector<8x144xf32>
    %c0_28 = arith.constant 0 : index
    %c0_29 = arith.constant 0 : index
    %52 = vector.load %arg9[%c0_28, %c0_29] : memref<52x144xf32, #tpu.memory_space<vmem>>, vector<8x144xf32>
    tpu.vector_store %arg9[%c0_28, %c0_29], %51 {strides = array<i32>} : memref<52x144xf32, #tpu.memory_space<vmem>>, vector<8x144xf32>,
    %cst_30 = arith.constant 0.000000e+00 : f32
    %53 = vector.broadcast %cst_30 : f32 to vector<8x144xf32>
    %c44 = arith.constant 44 : index
    %c0_31 = arith.constant 0 : index
    %54 = vector.load %arg9[%c44, %c0_31] : memref<52x144xf32, #tpu.memory_space<vmem>>, vector<8x144xf32>
    tpu.vector_store %arg9[%c44, %c0_31], %53 {strides = array<i32>} : memref<52x144xf32, #tpu.memory_space<vmem>>, vector<8x144xf32>,
    %55 = arith.mulf %50, %0 : vector<36x144xf32>
    %c8_32 = arith.constant 8 : index
    %c0_33 = arith.constant 0 : index
    %56 = vector.load %arg9[%c8_32, %c0_33] : memref<52x144xf32, #tpu.memory_space<vmem>>, vector<36x144xf32>
    tpu.vector_store %arg9[%c8_32, %c0_33], %55 {strides = array<i32>} : memref<52x144xf32, #tpu.memory_space<vmem>>, vector<36x144xf32>,
    %c7_34 = arith.constant 7 : index
    %c0_35 = arith.constant 0 : index
    %57 = vector.load %arg9[%c7_34, %c0_35] : memref<52x144xf32, #tpu.memory_space<vmem>>, vector<36x144xf32>
    %c0_36 = arith.constant 0 : index
    %c0_37 = arith.constant 0 : index
    %c0_38 = arith.constant 0 : index
    %58 = vector.load %arg5[%c0_36, %c0_37, %c0_38] : memref<3x144x144xf32, #tpu.memory_space<vmem>>, vector<1x144x144xf32>
    %59 = vector.shape_cast %58 : vector<1x144x144xf32> to vector<144x144xf32>
    %cst_39 = arith.constant dense<0.000000e+00> : vector<36x144xf32>
    %60 = tpu.matmul %57, %59, %cst_39 {dimension_numbers = #tpu.dot_dimension_numbers<[1], [0], [0], [1], [0, 0, 1, 1], [], []>} : vector<36x144xf32>, vector<144x144xf32>, vector<36x144xf32> -> vector<36x144xf32>
    %c8_40 = arith.constant 8 : index
    %c0_41 = arith.constant 0 : index
    %61 = vector.load %arg9[%c8_40, %c0_41] : memref<52x144xf32, #tpu.memory_space<vmem>>, vector<36x144xf32>
    %c1_42 = arith.constant 1 : index
    %c0_43 = arith.constant 0 : index
    %c0_44 = arith.constant 0 : index
    %62 = vector.load %arg5[%c1_42, %c0_43, %c0_44] : memref<3x144x144xf32, #tpu.memory_space<vmem>>, vector<1x144x144xf32>
    %63 = vector.shape_cast %62 : vector<1x144x144xf32> to vector<144x144xf32>
    %cst_45 = arith.constant dense<0.000000e+00> : vector<36x144xf32>
    %64 = tpu.matmul %61, %63, %cst_45 {dimension_numbers = #tpu.dot_dimension_numbers<[1], [0], [0], [1], [0, 0, 1, 1], [], []>} : vector<36x144xf32>, vector<144x144xf32>, vector<36x144xf32> -> vector<36x144xf32>
    %65 = arith.addf %60, %64 : vector<36x144xf32>
    %c9_46 = arith.constant 9 : index
    %c0_47 = arith.constant 0 : index
    %66 = vector.load %arg9[%c9_46, %c0_47] : memref<52x144xf32, #tpu.memory_space<vmem>>, vector<36x144xf32>
    %c2_48 = arith.constant 2 : index
    %c0_49 = arith.constant 0 : index
    %c0_50 = arith.constant 0 : index
    %67 = vector.load %arg5[%c2_48, %c0_49, %c0_50] : memref<3x144x144xf32, #tpu.memory_space<vmem>>, vector<1x144x144xf32>
    %68 = vector.shape_cast %67 : vector<1x144x144xf32> to vector<144x144xf32>
    %cst_51 = arith.constant dense<0.000000e+00> : vector<36x144xf32>
    %69 = tpu.matmul %66, %68, %cst_51 {dimension_numbers = #tpu.dot_dimension_numbers<[1], [0], [0], [1], [0, 0, 1, 1], [], []>} : vector<36x144xf32>, vector<144x144xf32>, vector<36x144xf32> -> vector<36x144xf32>
    %70 = arith.addf %65, %69 : vector<36x144xf32>
    %c0_52 = arith.constant 0 : index
    %c0_53 = arith.constant 0 : index
    %71 = vector.load %arg6[%c0_52, %c0_53] : memref<3x144xf32, #tpu.memory_space<vmem>>, vector<3x144xf32>
    %72 = vector.extract_strided_slice %71 {offsets = [0, 0], sizes = [1, 144], strides = [1, 1]} : vector<3x144xf32> to vector<1x144xf32>
    %73 = vector.broadcast %72 : vector<1x144xf32> to vector<36x144xf32>
    %74 = arith.addf %70, %73 : vector<36x144xf32>
    %75 = arith.mulf %74, %0 : vector<36x144xf32>
    %c0_54 = arith.constant 0 : index
    %c0_55 = arith.constant 0 : index
    %76 = vector.load %arg2[%c0_54, %c0_55] : memref<144x144xf32, #tpu.memory_space<vmem>>, vector<144x144xf32>
    %cst_56 = arith.constant dense<0.000000e+00> : vector<36x144xf32>
    %77 = tpu.matmul %75, %76, %cst_56 {dimension_numbers = #tpu.dot_dimension_numbers<[1], [0], [0], [1], [0, 0, 1, 1], [], []>} : vector<36x144xf32>, vector<144x144xf32>, vector<36x144xf32> -> vector<36x144xf32>
    %cst_57 = arith.constant dense<0.000000e+00> : vector<144xf32>
    %78 = vector.multi_reduction <add>, %77, %cst_57 [0] : vector<36x144xf32> to vector<144xf32>
    %79 = vector.shape_cast %78 : vector<144xf32> to vector<1x144xf32>
    %cst_58 = arith.constant 0.001953125 : f32
    %80 = vector.broadcast %cst_58 : f32 to vector<1x144xf32>
    %81 = arith.mulf %79, %80 : vector<1x144xf32>
    %82 = vector.broadcast %81 : vector<1x144xf32> to vector<36x144xf32>
    %83 = arith.subf %74, %82 : vector<36x144xf32>
    %84 = arith.mulf %83, %0 : vector<36x144xf32>
    %85 = arith.mulf %84, %84 : vector<36x144xf32>
    %c0_59 = arith.constant 0 : index
    %c0_60 = arith.constant 0 : index
    %86 = vector.load %arg2[%c0_59, %c0_60] : memref<144x144xf32, #tpu.memory_space<vmem>>, vector<144x144xf32>
    %cst_61 = arith.constant dense<0.000000e+00> : vector<36x144xf32>
    %87 = tpu.matmul %85, %86, %cst_61 {dimension_numbers = #tpu.dot_dimension_numbers<[1], [0], [0], [1], [0, 0, 1, 1], [], []>} : vector<36x144xf32>, vector<144x144xf32>, vector<36x144xf32> -> vector<36x144xf32>
    %cst_62 = arith.constant dense<0.000000e+00> : vector<144xf32>
    %88 = vector.multi_reduction <add>, %87, %cst_62 [0] : vector<36x144xf32> to vector<144xf32>
    %89 = vector.shape_cast %88 : vector<144xf32> to vector<1x144xf32>
    %cst_63 = arith.constant 0.001953125 : f32
    %90 = vector.broadcast %cst_63 : f32 to vector<1x144xf32>
    %91 = arith.mulf %89, %90 : vector<1x144xf32>
    %92 = vector.broadcast %81 : vector<1x144xf32> to vector<36x144xf32>
    %93 = arith.subf %74, %92 : vector<36x144xf32>
    %cst_64 = arith.constant 9.99999974E-6 : f32
    %94 = vector.broadcast %cst_64 : f32 to vector<1x144xf32>
    %95 = arith.addf %91, %94 : vector<1x144xf32>
    %96 = math.rsqrt %95 : vector<1x144xf32>
    %97 = vector.broadcast %96 : vector<1x144xf32> to vector<36x144xf32>
    %98 = arith.mulf %93, %97 : vector<36x144xf32>
    %99 = vector.extract_strided_slice %71 {offsets = [1, 0], sizes = [1, 144], strides = [1, 1]} : vector<3x144xf32> to vector<1x144xf32>
    %100 = vector.broadcast %99 : vector<1x144xf32> to vector<36x144xf32>
    %101 = arith.mulf %98, %100 : vector<36x144xf32>
    %102 = vector.extract_strided_slice %71 {offsets = [2, 0], sizes = [1, 144], strides = [1, 1]} : vector<3x144xf32> to vector<1x144xf32>
    %103 = vector.broadcast %102 : vector<1x144xf32> to vector<36x144xf32>
    %104 = arith.addf %101, %103 : vector<36x144xf32>
    %cst_65 = arith.constant 0.000000e+00 : f32
    %105 = vector.broadcast %cst_65 : f32 to vector<36x144xf32>
    %106 = arith.maximumf %104, %105 : vector<36x144xf32>
    %c0_66 = arith.constant 0 : index
    %c0_67 = arith.constant 0 : index
    %107 = vector.load %arg7[%c0_66, %c0_67] : memref<36x144xf32, #tpu.memory_space<vmem>>, vector<36x144xf32>
    tpu.vector_store %arg7[%c0_66, %c0_67], %106 {strides = array<i32>} : memref<36x144xf32, #tpu.memory_space<vmem>>, vector<36x144xf32>,
    %108 = vector.extract_strided_slice %106 {offsets = [0, 0], sizes = [36, 136], strides = [1, 1]} : vector<36x144xf32> to vector<36x136xf32>
    %109 = vector.extract_strided_slice %106 {offsets = [0, 8], sizes = [36, 136], strides = [1, 1]} : vector<36x144xf32> to vector<36x136xf32>
    %110 = arith.maximumf %108, %109 : vector<36x136xf32>
    %111 = vector.extract_strided_slice %110 {offsets = [0, 0], sizes = [35, 136], strides = [1, 1]} : vector<36x136xf32> to vector<35x136xf32>
    %112 = vector.extract_strided_slice %110 {offsets = [1, 0], sizes = [35, 136], strides = [1, 1]} : vector<36x136xf32> to vector<35x136xf32>
    %113 = arith.maximumf %111, %112 : vector<35x136xf32>
    %c0_68 = arith.constant 0 : index
    %c0_69 = arith.constant 0 : index
    %114 = vector.load %arg8[%c0_68, %c0_69] : memref<35x136xf32, #tpu.memory_space<vmem>>, vector<35x136xf32>
    tpu.vector_store %arg8[%c0_68, %c0_69], %113 {strides = array<i32>} : memref<35x136xf32, #tpu.memory_space<vmem>>, vector<35x136xf32>,
    return
  }
}

</mosaic_0001>

<bundles_post_ra>
// kernel: tile.33
= control target key start
LH: loop header
LB: loop body
LE: loop exit
PB: predicated region body
PF: predicated region fallthrough
CT: control target
= control target key end

     0   :  { %2 = vsyncpa [#allocation1], 0  ;;  %s48_s6 = smov [#allocation0]   ;;  %s71_s0 = inlined_call_operand.hbm [shape: f32[8], index: 0, kind: input, shape index: {}]   ;;  %s72_s1 = inlined_call_operand.vmem [shape: f32[18,8], index: 1, kind: output, shape index: {}]  }
   0x1   :  { %s9_s7 = sshll.u32 %s48_s6, 4  ;;  %s10_s7 = int_to_ptr.vmem [resolvable:$true] %s9_s7 }
   0x2   :  { %s34_s8 = scalar_lea.vmem %s10_s7, 16  ;;  %s38_s9 = scalar_lea.vmem %s10_s7, 32 }
   0x3   :  { %p35_p0 = scmp.ne.s32.totalorder %s10_s7, %s34_s8  ;;  %p39_p1 = scmp.lt.s32.totalorder %s10_s7, %s10_s7 }
   0x4   :  { %p40_p2 = scmp.lt.s32.totalorder %s38_s9, %s34_s8 }
   0x6   :  { %p41_p3 = por %p40_p2, %p39_p1 }
   0x8   :  { %p42_p4 = pnand %p41_p3, %p35_p0 }
   0xa   :  { %45 = shalt.err (!%p42_p4)
}
   0xb   :  { %12 = dma.hbm_to_vmem [thread:$0]  %s71_s0, 16, %s10_s7, [#allocation1]  }
   0xc   :  { %46 = dma.done.wait [#allocation1], 16  }
   0xd   :  { %47 = vsyncadd [#allocation1], 4294967280  ;;  %v16_v0 = vld [vmem:[#allocation0] ss:$0 sm:$0xff] }
   0xe   :  { %17 = vst [vmem:[%s72_s1] sm:$0xff] %v16_v0  ;;  %23 = vst [vmem:[%s72_s1 + $0x8] sm:$0xff] %v16_v0 }
   0xf   :  { %24 = vst [vmem:[%s72_s1 + $0x10] sm:$0xff] %v16_v0 }
  0x10   :  { %22 = vsyncpa [#allocation1], 1 }

// kernel: tile.42
= control target key start
LH: loop header
LB: loop body
LE: loop exit
PB: predicated region body
PF: predicated region fallthrough
CT: control target
= control target key end

     0   :  { %s142_s10 = smov 120   ;;  %s143_s11 = smov 104   ;;  %vm4_vm0 = vcmask 64512   ;;  %vm10_vm1 = vcmask 1048512   ;;  %vm16_vm2 = vcmask 982912   ;;  %vm22_vm3 = vcmask 917312   ;;  %s221_s0 = inlined_call_operand.vmem [shape: f32[18,8], index: 0, kind: input, shape index: {}]   ;;  %s222_s1 = inlined_call_operand.vmem [shape: f32[1,144], index: 1, kind: output, shape index: {}]  }
   0x1   :  { %v111_v0 = vld [vmem:[%s221_s0 + $0xf] sm:$0x1]   ;;  %v113_v1 = vld [vmem:[%s221_s0 + $0xd] sm:$0x1]   ;;  %v112_v2 = vld [vmem:[%s221_s0 + $0xe] sm:$0x1]  }
   0x2   :  { %8 = vrot.lane.b32.xlu0 %v111_v0, %s142_s10  ;;  %20 = vrot.lane.b32.xlu1 %v113_v1, %s143_s11  ;;  %v114_v3 = vld [vmem:[%s221_s0 + $0xc] sm:$0x1]   ;;  %s144_s16 = smov 112   ;;  %s145_s17 = smov 96   ;;  %v115_v4 = vld [vmem:[%s221_s0 + $0xb] sm:$0x1]  }
   0x3   :  { %v116_v5 = vld [vmem:[%s221_s0 + $0xa] sm:$0x1]   ;;  %s2_s22 = smov 3  ;;  %s146_s23 = smov 88   ;;  %v117_v7 = vld [vmem:[%s221_s0 + $0x9] sm:$0x1]  }
   0x4   :  { %s147_s24 = smov 80   ;;  %v3_v6 = vld [vmem:[%s221_s0] ss:$16 sm:%s2_s22]   ;;  %v118_v8 = vld [vmem:[%s221_s0 + $0x8] sm:$0x1]   ;;  %s148_s2 = smov 72  }
   0x5   :  { %5 = vst.msk [vmem:[#allocation0] ss:$8 sm:$0x3] %vm4_vm0, %v3_v6   ;;  %s149_s3 = smov 64   ;;  %v119_v9 = vld [vmem:[%s221_s0 + $0x7] sm:$0x1]  }
   0x6   :  { %14 = vrot.lane.b32.xlu0 %v112_v2, %s144_s16  ;;  %26 = vrot.lane.b32.xlu1 %v114_v3, %s145_s17  ;;  %v120_v10 = vld [vmem:[%s221_s0 + $0x6] sm:$0x1]   ;;  %s150_s8 = smov 56   ;;  %s151_s9 = smov 48   ;;  %v121_v11 = vld [vmem:[%s221_s0 + $0x5] sm:$0x1]  }
   0x7   :  { %v122_v12 = vld [vmem:[%s221_s0 + $0x4] sm:$0x1]   ;;  %s152_s14 = smov 40   ;;  %s153_s15 = smov 32   ;;  %v123_v13 = vld [vmem:[%s221_s0 + $0x3] sm:$0x1]  }
   0x8   :  { %v124_v14 = vld [vmem:[%s221_s0 + $0x2] sm:$0x1]   ;;  %s91_s20 = smov 3  ;;  %s154_s21 = smov 24   ;;  %vm28_vm4 = vcmask 851712   ;;  %vm34_vm5 = vcmask 786112  }
   0x9   :  { %s155_s22 = smov 16   ;;  %v125_v15 = vld [vmem:[%s221_s0 + $0x1] ss:$16 sm:%s91_s20]   ;;  %s156_s0 = smov 8   ;;  %vm40_vm6 = vcmask 720512   ;;  %vm46_vm7 = vcmask 654912  }
   0xa   :  { %32 = vrot.lane.b32.xlu0 %v115_v4, %s146_s23  ;;  %38 = vrot.lane.b32.xlu1 %v116_v5, %s147_s24  ;;  %vm52_vm8 = vcmask 589312   ;;  %vm58_vm9 = vcmask 523712   ;;  %vm64_vm10 = vcmask 458112   ;;  %vm70_vm11 = vcmask 392512  }
   0xb   :  { %vm76_vm12 = vcmask 326912   ;;  %vm82_vm13 = vcmask 261312   ;;  %vm88_vm14 = vcmask 195712   ;;  %vm95_vm15 = vcmask 130112  }
   0xe   :  { %44 = vrot.lane.b32.xlu0 %v117_v7, %s148_s2  ;;  %50 = vrot.lane.b32.xlu1 %v118_v8, %s149_s3 }
  0x12   :  { %56 = vrot.lane.b32.xlu0 %v119_v9, %s150_s8  ;;  %62 = vrot.lane.b32.xlu1 %v120_v10, %s151_s9 }
  0x16   :  { %68 = vrot.lane.b32.xlu0 %v121_v11, %s152_s14  ;;  %74 = vrot.lane.b32.xlu1 %v122_v12, %s153_s15 }
  0x1a   :  { %80 = vrot.lane.b32.xlu0 %v123_v13, %s154_s21  ;;  %86 = vrot.lane.b32.xlu1 %v124_v14, %s155_s22 }
  0x1e   :  { %93 = vrot.lane.b32.xlu0 %v125_v15, %s156_s0 }
  0x74   :  { %v9_v16 = vpop.permute.xlu0 %8   ;;  %v21_v17 = vpop.permute.xlu1 %20  }
  0x75   :  { %11 = vst.msk [vmem:[#allocation0] sm:$0x1] %vm10_vm1, %v9_v16  }
  0x78   :  { %v15_v18 = vpop.permute.xlu0 %14   ;;  %v27_v19 = vpop.permute.xlu1 %26  }
  0x79   :  { %17 = vst.msk [vmem:[#allocation0] sm:$0x1] %vm16_vm2, %v15_v18  }
  0x7a   :  { %23 = vst.msk [vmem:[#allocation0] sm:$0x1] %vm22_vm3, %v21_v17  }
  0x7b   :  { %29 = vst.msk [vmem:[#allocation0] sm:$0x1] %vm28_vm4, %v27_v19  }
  0x7c   :  { %v33_v20 = vpop.permute.xlu0 %32   ;;  %v39_v21 = vpop.permute.xlu1 %38  }
  0x7d   :  { %35 = vst.msk [vmem:[#allocation0] sm:$0x1] %vm34_vm5, %v33_v20  }
  0x7e   :  { %41 = vst.msk [vmem:[#allocation0] sm:$0x1] %vm40_vm6, %v39_v21  }
  0x80   :  { %v45_v22 = vpop.permute.xlu0 %44   ;;  %v51_v23 = vpop.permute.xlu1 %50  }
  0x81   :  { %47 = vst.msk [vmem:[#allocation0] sm:$0x1] %vm46_vm7, %v45_v22  }
  0x82   :  { %53 = vst.msk [vmem:[#allocation0] sm:$0x1] %vm52_vm8, %v51_v23  }
  0x84   :  { %v57_v24 = vpop.permute.xlu0 %56   ;;  %v63_v25 = vpop.permute.xlu1 %62  }
  0x85   :  { %59 = vst.msk [vmem:[#allocation0] sm:$0x1] %vm58_vm9, %v57_v24  }
  0x86   :  { %65 = vst.msk [vmem:[#allocation0] sm:$0x1] %vm64_vm10, %v63_v25  }
  0x88   :  { %v69_v26 = vpop.permute.xlu0 %68   ;;  %v75_v27 = vpop.permute.xlu1 %74  }
  0x89   :  { %71 = vst.msk [vmem:[#allocation0] sm:$0x1] %vm70_vm11, %v69_v26  }
  0x8a   :  { %77 = vst.msk [vmem:[#allocation0] sm:$0x1] %vm76_vm12, %v75_v27  }
  0x8c   :  { %v81_v28 = vpop.permute.xlu0 %80   ;;  %v87_v29 = vpop.permute.xlu1 %86  }
  0x8d   :  { %83 = vst.msk [vmem:[#allocation0] sm:$0x1] %vm82_vm13, %v81_v28  }
  0x8e   :  { %89 = vst.msk [vmem:[#allocation0] sm:$0x1] %vm88_vm14, %v87_v29  }
  0x90   :  { %v94_v30 = vpop.permute.xlu0 %93  }
  0x91   :  { %96 = vst.msk [vmem:[#allocation0] ss:$8 sm:$0x3] %vm95_vm15, %v94_v30  }
  0x98   :  { %v101_v31 = vld [vmem:[#allocation0] sm:$0x1]  ;;  %v106_v32 = vld [vmem:[#allocation0 + $0x8] sm:$0x1] }
  0x99   :  { %104 = vst [vmem:[%s222_s1] sm:$0x1] %v101_v31  ;;  %126 = vst [vmem:[%s222_s1 + $0x1] sm:$0x1] %v106_v32 }

// kernel: downsample_forward.1
= control target key start
LH: loop header
LB: loop body
LE: loop exit
PB: predicated region body
PF: predicated region fallthrough
CT: control target
= control target key end

     0   :  { %v2239_v3 = vmov 0.0   ;;  %vm85_vm0 = vcmask 588800   ;;  %vm526_vm1 = vcmask 130048   ;;  %vm656_vm2 = vcmask 125952   ;;  %s3680_s3 = inlined_call_operand.vmem [shape: f32[3,72,144], index: 3, kind: input, shape index: {}]   ;;  %s3681_s0 = inlined_call_operand.vmem [shape: f32[52,72], index: 0, kind: input, shape index: {}]   ;;  %s3682_s2 = inlined_call_operand.vmem [shape: f32[144,144], index: 2, kind: input, shape index: {}]   ;;  %s3683_s4 = inlined_call_operand.vmem [shape: f32[3,144], index: 4, kind: input, shape index: {}]   ;;  %s3684_s1 = inlined_call_operand.vmem [shape: f32[36,144], index: 1, kind: input, shape index: {}]   ;;  %s3685_s5 = inlined_call_operand.vmem [shape: f32[3,144,144], index: 5, kind: input, shape index: {}]   ;;  %s3686_s6 = inlined_call_operand.vmem [shape: f32[3,144], index: 6, kind: input, shape index: {}]   ;;  %s3687_s7 = inlined_call_operand.vmem [shape: f32[36,144], index: 7, kind: output, shape index: {0}]   ;;  %s3688_s8 = inlined_call_operand.vmem [shape: f32[35,136], index: 8, kind: output, shape index: {1}]  }
   0x1   :  { %v2077_v0 = vld [vmem:[%s3680_s3 + $0x118] sm:$0xff]  ;;  %v60_v1 = vld [vmem:[%s3680_s3 + $0x88] sm:$0xff]  ;;  %v2076_v2 = vld [vmem:[%s3680_s3 + $0x110] sm:$0xff]  ;;  %165 = vmatprep.mubr.f32.mxu0 %v2239_v3  ;;  %915 = vst [vmem:[#allocation2] sm:$0xff] %v2239_v3  ;;  %275 = vmatprep.mubr.f32.mxu1 %v2239_v3  ;;  %vm640_vm3 = vcmask 1043456   ;;  %vm918_vm4 = vcmask 130052  }
   0x2   :  { %917 = vst [vmem:[#allocation2 + $0x50] sm:$0xf0] %v2239_v3  ;;  %115 = vmatprep.subr.mxu0 %v2077_v0  ;;  %225 = vmatprep.subr.mxu1 %v60_v1  ;;  %v59_v4 = vld [vmem:[%s3680_s3 + $0x80] sm:$0xff]  ;;  %v2075_v5 = vld [vmem:[%s3680_s3 + $0x108] sm:$0xff]  ;;  %v58_v6 = vld [vmem:[%s3680_s3 + $0x78] sm:$0xff]  ;;  %vm1147_vm5 = vcmask 1040384  }
   0x3   :  { %116 = vmatpush1.msra.mxu0 %v2076_v2  ;;  %226 = vmatpush1.msra.mxu1 %v59_v4  ;;  %v2074_v7 = vld [vmem:[%s3680_s3 + $0x100] sm:$0xff]  ;;  %v57_v8 = vld [vmem:[%s3680_s3 + $0x70] sm:$0xff]  ;;  %v2073_v9 = vld [vmem:[%s3680_s3 + $0xf8] sm:$0xff]  ;;  %916 = vst.msk [vmem:[#allocation2 + $0x8] sm:$0xff] %vm526_vm1, %v2239_v3  ;;  %vm1325_vm6 = vcmask 1046528   ;;  %vm1966_vm7 = vcmask 982016  }
   0x4   :  { %117 = vmatprep.subr.mxu0 %v2075_v5  ;;  %227 = vmatprep.subr.mxu1 %v58_v6  ;;  %v56_v10 = vld [vmem:[%s3680_s3 + $0x68] sm:$0xff]  ;;  %v2072_v11 = vld [vmem:[%s3680_s3 + $0xf0] sm:$0xff]  ;;  %v55_v12 = vld [vmem:[%s3680_s3 + $0x60] sm:$0xff]  ;;  %vm2041_vm8 = vcmask 64512   ;;  %vm2050_vm9 = vcmask 59392  }
   0x5   :  { %118 = vmatpush1.msra.mxu0 %v2074_v7  ;;  %228 = vmatpush1.msra.mxu1 %v57_v8  ;;  %v2071_v13 = vld [vmem:[%s3680_s3 + $0xe8] sm:$0xff]  ;;  %v54_v14 = vld [vmem:[%s3680_s3 + $0x58] sm:$0xff]  ;;  %v2070_v15 = vld [vmem:[%s3680_s3 + $0xe0] sm:$0xff] }
   0x6   :  { %119 = vmatprep.subr.mxu0 %v2073_v9  ;;  %229 = vmatprep.subr.mxu1 %v56_v10  ;;  %v53_v16 = vld [vmem:[%s3680_s3 + $0x50] sm:$0xff]  ;;  %v2069_v17 = vld [vmem:[%s3680_s3 + $0xd8] sm:$0xff]  ;;  %v52_v18 = vld [vmem:[%s3680_s3 + $0x48] sm:$0xff] }
   0x7   :  { %120 = vmatpush1.msra.mxu0 %v2072_v11  ;;  %230 = vmatpush1.msra.mxu1 %v55_v12  ;;  %v2068_v19 = vld [vmem:[%s3680_s3 + $0xd0] sm:$0xff]  ;;  %v51_v20 = vld [vmem:[%s3680_s3 + $0x40] sm:$0xff]  ;;  %v2067_v21 = vld [vmem:[%s3680_s3 + $0xc8] sm:$0xff] }
   0x8   :  { %121 = vmatprep.subr.mxu0 %v2071_v13  ;;  %231 = vmatprep.subr.mxu1 %v54_v14  ;;  %v50_v22 = vld [vmem:[%s3680_s3 + $0x38] sm:$0xff]  ;;  %v2066_v23 = vld [vmem:[%s3680_s3 + $0xc0] sm:$0xff]  ;;  %v49_v24 = vld [vmem:[%s3680_s3 + $0x30] sm:$0xff] }
   0x9   :  { %122 = vmatpush1.msra.mxu0 %v2070_v15  ;;  %232 = vmatpush1.msra.mxu1 %v53_v16  ;;  %v2065_v25 = vld [vmem:[%s3680_s3 + $0xb8] sm:$0xff]  ;;  %v48_v26 = vld [vmem:[%s3680_s3 + $0x28] sm:$0xff]  ;;  %v2064_v27 = vld [vmem:[%s3680_s3 + $0xb0] sm:$0xff] }
   0xa   :  { %123 = vmatprep.subr.mxu0 %v2069_v17  ;;  %233 = vmatprep.subr.mxu1 %v52_v18  ;;  %v47_v28 = vld [vmem:[%s3680_s3 + $0x20] sm:$0xff]  ;;  %v2063_v29 = vld [vmem:[%s3680_s3 + $0xa8] sm:$0xff]  ;;  %v46_v30 = vld [vmem:[%s3680_s3 + $0x18] sm:$0xff] }
   0xb   :  { %124 = vmatpush1.msra.mxu0 %v2068_v19  ;;  %234 = vmatpush1.msra.mxu1 %v51_v20  ;;  %v2062_v31 = vld [vmem:[%s3680_s3 + $0xa0] sm:$0xff]  ;;  %v45_v32 = vld [vmem:[%s3680_s3 + $0x10] sm:$0xff]  ;;  %v2061_v33 = vld [vmem:[%s3680_s3 + $0x98] sm:$0xff] }
   0xc   :  { %125 = vmatprep.subr.mxu0 %v2067_v21  ;;  %235 = vmatprep.subr.mxu1 %v50_v22  ;;  %v44_v34 = vld [vmem:[%s3680_s3 + $0x8] sm:$0xff]  ;;  %v2060_v35 = vld [vmem:[%s3680_s3 + $0x90] sm:$0xff]  ;;  %v43_v36 = vld [vmem:[%s3680_s3] sm:$0xff] }
   0xd   :  { %126 = vmatpush1.msra.mxu0 %v2066_v23  ;;  %236 = vmatpush1.msra.mxu1 %v49_v24  ;;  %v61_v37 = vld [vmem:[%s3681_s0 + $0x8] sm:$0xff]  ;;  %v2104_v40 = vld [vmem:[%s3680_s3 + $0x1a0] sm:$0xff]  ;;  %v2103_v41 = vld [vmem:[%s3680_s3 + $0x198] sm:$0xff] }
   0xe   :  { %127 = vmatprep.subr.mxu0 %v2065_v25  ;;  %237 = vmatprep.subr.mxu1 %v48_v26  ;;  %v38_v38 = vld [vmem:[%s3681_s0 + $0x7] sm:$0xff]  ;;  %v62_v42 = vld [vmem:[%s3681_s0 + $0x10] sm:$0xff]  ;;  %v521_v47 = vld [vmem:[%s3682_s2 + $0xf8] sm:$0xff] }
   0xf   :  { %128 = vmatpush1.msra.mxu0 %v2064_v27  ;;  %238 = vmatpush1.msra.mxu1 %v47_v28  ;;  %v2105_v39 = vld [vmem:[%s3680_s3 + $0x1a8] sm:$0xff]  ;;  %v2102_v44 = vld [vmem:[%s3680_s3 + $0x190] sm:$0xff]  ;;  %v2100_v46 = vld [vmem:[%s3680_s3 + $0x180] sm:$0xff] }
  0x10   :  { %129 = vmatprep.subr.mxu0 %v2063_v29  ;;  %239 = vmatprep.subr.mxu1 %v46_v30  ;;  %v39_v43 = vld [vmem:[%s3681_s0 + $0xf] sm:$0xff]  ;;  %v2099_v48 = vld [vmem:[%s3680_s3 + $0x178] sm:$0xff]  ;;  %v2096_v53 = vld [vmem:[%s3680_s3 + $0x160] sm:$0xff] }
  0x11   :  { %130 = vmatpush1.msra.mxu0 %v2062_v31  ;;  %240 = vmatpush1.msra.mxu1 %v45_v32  ;;  %v2101_v45 = vld [vmem:[%s3680_s3 + $0x188] sm:$0xff]  ;;  %v63_v49 = vld [vmem:[%s3681_s0 + $0x18] sm:$0xff]  ;;  %v2098_v51 = vld [vmem:[%s3680_s3 + $0x170] sm:$0xff] }
  0x12   :  { %131 = vmatprep.subr.mxu0 %v2061_v33  ;;  %241 = vmatprep.subr.mxu1 %v44_v34  ;;  %v40_v50 = vld [vmem:[%s3681_s0 + $0x17] sm:$0xff]  ;;  %v2097_v52 = vld [vmem:[%s3680_s3 + $0x168] sm:$0xff]  ;;  %v64_v54 = vld [vmem:[%s3681_s0 + $0x20] sm:$0xff] }
  0x13   :  { %132 = vmatpush1.msra.mxu0 %v2060_v35  ;;  %242 = vmatpush1.msra.mxu1 %v43_v36  ;;  %v2095_v55 = vld [vmem:[%s3680_s3 + $0x158] sm:$0xff]  ;;  %v2094_v57 = vld [vmem:[%s3680_s3 + $0x150] sm:$0xff]  ;;  %v2093_v58 = vld [vmem:[%s3680_s3 + $0x148] sm:$0xff] }
  0x14   :  { %2078 = vmatmul.mubr.msk.f32.vlgmr.msra.gmra.mxu0 %vm85_vm0, %v61_v37  ;;  %2083 = vmatmul.mubr.msk.f32.vlgmr.msra.gmra.mxu1 %vm85_vm0, %v38_v38  ;;  %v41_v56 = vld [vmem:[%s3681_s0 + $0x1f] sm:$0xff]  ;;  %v65_v60 = vld [vmem:[%s3681_s0 + $0x28] sm:$0xf]  ;;  %v2090_v63 = vld [vmem:[%s3680_s3 + $0x130] sm:$0xff] }
  0x15   :  { %359 = vmatprep.subr.mxu0 %v2105_v39  ;;  %171 = vmatprep.mubr.f32.mxu0 %v2239_v3  ;;  %v2092_v59 = vld [vmem:[%s3680_s3 + $0x140] sm:$0xff]  ;;  %v2091_v61 = vld [vmem:[%s3680_s3 + $0x138] sm:$0xff]  ;;  %v2089_v0 = vld [vmem:[%s3680_s3 + $0x128] sm:$0xff] }
  0x16   :  { %360 = vmatpush1.msra.mxu0 %v2104_v40  ;;  %281 = vmatprep.mubr.f32.mxu1 %v2239_v3  ;;  %v42_v62 = vld [vmem:[%s3681_s0 + $0x27] sm:$0xf]  ;;  %v520_v2 = vld [vmem:[%s3682_s2 + $0xf0] sm:$0xff]  ;;  %v517_v7 = vld [vmem:[%s3682_s2 + $0xd8] sm:$0xff] }
  0x17   :  { %361 = vmatprep.subr.mxu0 %v2103_v41  ;;  %542 = vmatprep.subr.mxu1 %v521_v47  ;;  %v2088_v1 = vld [vmem:[%s3680_s3 + $0x120] sm:$0xff]  ;;  %v306_v4 = vld [vmem:[%s3681_s0 + $0x9] sm:$0xff]  ;;  %v307_v9 = vld [vmem:[%s3681_s0 + $0x11] sm:$0xff] }
  0x18   :  { %2079 = vmatmul.mubr.msk.f32.gmra.mxu0 %vm85_vm0, %v62_v42  ;;  %2084 = vmatmul.mubr.msk.f32.gmra.mxu1 %vm85_vm0, %v39_v43  ;;  %v519_v5 = vld [vmem:[%s3682_s2 + $0xe8] sm:$0xff]  ;;  %v518_v6 = vld [vmem:[%s3682_s2 + $0xe0] sm:$0xff]  ;;  %v516_v8 = vld [vmem:[%s3682_s2 + $0xd0] sm:$0xff] }
  0x19   :  { %362 = vmatpush1.msra.mxu0 %v2102_v44  ;;  %177 = vmatprep.mubr.f32.mxu0 %v2239_v3  ;;  %v308_v10 = vld [vmem:[%s3681_s0 + $0x19] sm:$0xff]  ;;  %v309_v11 = vld [vmem:[%s3681_s0 + $0x21] sm:$0xff]  ;;  %v310_v12 = vld [vmem:[%s3681_s0 + $0x29] sm:$0xf] }
  0x1a   :  { %363 = vmatprep.subr.mxu0 %v2101_v45  ;;  %287 = vmatprep.mubr.f32.mxu1 %v2239_v3  ;;  %v515_v13 = vld [vmem:[%s3682_s2 + $0xc8] sm:$0xff]  ;;  %v514_v14 = vld [vmem:[%s3682_s2 + $0xc0] sm:$0xff]  ;;  %v513_v15 = vld [vmem:[%s3682_s2 + $0xb8] sm:$0xff] }
  0x1b   :  { %364 = vmatpush1.msra.mxu0 %v2100_v46  ;;  %543 = vmatpush1.msra.mxu1 %v520_v2  ;;  %v512_v16 = vld [vmem:[%s3682_s2 + $0xb0] sm:$0xff]  ;;  %v511_v17 = vld [vmem:[%s3682_s2 + $0xa8] sm:$0xff]  ;;  %v510_v18 = vld [vmem:[%s3682_s2 + $0xa0] sm:$0xff] }
  0x1c   :  { %365 = vmatprep.subr.mxu0 %v2099_v48  ;;  %2080 = vmatmul.mubr.msk.f32.gmra.mxu0 %vm85_vm0, %v63_v49  ;;  %v509_v19 = vld [vmem:[%s3682_s2 + $0x98] sm:$0xff]  ;;  %v508_v20 = vld [vmem:[%s3682_s2 + $0x90] sm:$0xff]  ;;  %v507_v21 = vld [vmem:[%s3682_s2 + $0x88] sm:$0xff]  ;;  %v452_v48 = vlaneseq }
  0x1d   :  { %2085 = vmatmul.mubr.msk.f32.gmra.mxu1 %vm85_vm0, %v40_v50  ;;  %366 = vmatpush1.msra.mxu0 %v2098_v51  ;;  %v506_v22 = vld [vmem:[%s3682_s2 + $0x80] sm:$0xff]  ;;  %v505_v23 = vld [vmem:[%s3682_s2 + $0x78] sm:$0xff]  ;;  %v504_v24 = vld [vmem:[%s3682_s2 + $0x70] sm:$0xff] }
  0x1e   :  { %367 = vmatprep.subr.mxu0 %v2097_v52  ;;  %183 = vmatprep.mubr.f32.mxu0 %v2239_v3  ;;  %v503_v25 = vld [vmem:[%s3682_s2 + $0x68] sm:$0xff]  ;;  %v502_v26 = vld [vmem:[%s3682_s2 + $0x60] sm:$0xff]  ;;  %v501_v27 = vld [vmem:[%s3682_s2 + $0x58] sm:$0xff]  ;;  %v2635_v52 = vshrl.u32 %v452_v48, 7 }
  0x1f   :  { %368 = vmatpush1.msra.mxu0 %v2096_v53  ;;  %293 = vmatprep.mubr.f32.mxu1 %v2239_v3  ;;  %v500_v28 = vld [vmem:[%s3682_s2 + $0x50] sm:$0xff]  ;;  %v499_v29 = vld [vmem:[%s3682_s2 + $0x48] sm:$0xff]  ;;  %v498_v30 = vld [vmem:[%s3682_s2 + $0x40] sm:$0xff] }
  0x20   :  { %2081 = vmatmul.mubr.msk.f32.gmra.mxu0 %vm85_vm0, %v64_v54  ;;  %369 = vmatprep.subr.mxu0 %v2095_v55  ;;  %v497_v31 = vld [vmem:[%s3682_s2 + $0x38] sm:$0xff]  ;;  %v496_v32 = vld [vmem:[%s3682_s2 + $0x30] sm:$0xff]  ;;  %v495_v33 = vld [vmem:[%s3682_s2 + $0x28] sm:$0xff] }
  0x21   :  { %2086 = vmatmul.mubr.msk.f32.gmra.mxu1 %vm85_vm0, %v41_v56  ;;  %370 = vmatpush1.msra.mxu0 %v2094_v57  ;;  %v494_v34 = vld [vmem:[%s3682_s2 + $0x20] sm:$0xff]  ;;  %v493_v35 = vld [vmem:[%s3682_s2 + $0x18] sm:$0xff]  ;;  %v492_v36 = vld [vmem:[%s3682_s2 + $0x10] sm:$0xff]  ;;  %v2638_v56 = vsub.s32 0, %v2635_v52  ;;  %v458_v57 = vsub.s32 4, %v2635_v52 }
  0x22   :  { %371 = vmatprep.subr.mxu0 %v2093_v58  ;;  %189 = vmatprep.mubr.f32.mxu0 %v2239_v3  ;;  %v491_v37 = vld [vmem:[%s3682_s2 + $0x8] sm:$0xff]  ;;  %v490_v38 = vld [vmem:[%s3682_s2] sm:$0xff]  ;;  %v525_v39 = vld [vmem:[%s3682_s2 + $0x118] sm:$0xff] }
  0x23   :  { %299 = vmatprep.mubr.f32.mxu1 %v2239_v3  ;;  %372 = vmatpush1.msra.mxu0 %v2092_v59  ;;  %v524_v40 = vld [vmem:[%s3682_s2 + $0x110] sm:$0xff]  ;;  %v523_v41 = vld [vmem:[%s3682_s2 + $0x108] sm:$0xff]  ;;  %v522_v42 = vld [vmem:[%s3682_s2 + $0x100] sm:$0xff] }
  0x24   :  { %2082 = vmatmul.mubr.msk.f32.gmra.mxu0 %vm85_vm0, %v65_v60  ;;  %373 = vmatprep.subr.mxu0 %v2091_v61 }
  0x25   :  { %2087 = vmatmul.mubr.msk.f32.gmra.mxu1 %vm85_vm0, %v42_v62  ;;  %374 = vmatpush1.msra.mxu0 %v2090_v63 }
  0x26   :  { %375 = vmatprep.subr.mxu0 %v2089_v0  ;;  %409 = vmatprep.mubr.f32.mxu0 %v2239_v3 }
  0x27   :  { %376 = vmatpush1.msra.mxu0 %v2088_v1  ;;  %544 = vmatprep.subr.mxu1 %v519_v5 }
  0x28   :  { %2106 = vmatmul.mubr.msk.f32.vlgmr.msra.gmra.mxu0 %vm85_vm0, %v306_v4  ;;  %545 = vmatpush1.msra.mxu1 %v518_v6 }
  0x29   :  { %415 = vmatprep.mubr.f32.mxu0 %v2239_v3  ;;  %546 = vmatprep.subr.mxu1 %v517_v7 }
  0x2a   :  { %712 = vmatprep.subr.mxu0 %v521_v47  ;;  %547 = vmatpush1.msra.mxu1 %v516_v8 }
  0x2b   :  { %713 = vmatpush1.msra.mxu0 %v520_v2  ;;  %548 = vmatprep.subr.mxu1 %v515_v13 }
  0x2c   :  { %2107 = vmatmul.mubr.msk.f32.gmra.mxu0 %vm85_vm0, %v307_v9  ;;  %714 = vmatprep.subr.mxu0 %v519_v5 }
  0x2d   :  { %421 = vmatprep.mubr.f32.mxu0 %v2239_v3  ;;  %715 = vmatpush1.msra.mxu0 %v518_v6 }
  0x2e   :  { %716 = vmatprep.subr.mxu0 %v517_v7  ;;  %549 = vmatpush1.msra.mxu1 %v514_v14 }
  0x2f   :  { %717 = vmatpush1.msra.mxu0 %v516_v8  ;;  %550 = vmatprep.subr.mxu1 %v513_v15 }
  0x30   :  { %2108 = vmatmul.mubr.msk.f32.gmra.mxu0 %vm85_vm0, %v308_v10  ;;  %718 = vmatprep.subr.mxu0 %v515_v13  ;;  %v2663_v13 = vld [vmem:[%s3684_s1 + $0x8] sm:$0xff] }
  0x31   :  { %427 = vmatprep.mubr.f32.mxu0 %v2239_v3  ;;  %719 = vmatpush1.msra.mxu0 %v514_v14 }
  0x32   :  { %720 = vmatprep.subr.mxu0 %v513_v15  ;;  %551 = vmatpush1.msra.mxu1 %v512_v16 }
  0x33   :  { %721 = vmatpush1.msra.mxu0 %v512_v16  ;;  %552 = vmatprep.subr.mxu1 %v511_v17  ;;  %v2668_v16 = vld [vmem:[%s3684_s1] sm:$0xff] }
  0x34   :  { %2109 = vmatmul.mubr.msk.f32.gmra.mxu0 %vm85_vm0, %v309_v11  ;;  %722 = vmatprep.subr.mxu0 %v511_v17 }
  0x35   :  { %433 = vmatprep.mubr.f32.mxu0 %v2239_v3  ;;  %553 = vmatpush1.msra.mxu1 %v510_v18  ;;  %v2643_v3 = vld [vmem:[%s3683_s4] sm:$0x77] }
  0x36   :  { %723 = vmatpush1.msra.mxu0 %v510_v18  ;;  %554 = vmatprep.subr.mxu1 %v509_v19  ;;  %v455_v61 = vrot.slane %v2643_v3, %v2638_v56  ;;  %v459_v62 = vrot.slane %v2643_v3, %v458_v57 }
  0x37   :  { %724 = vmatprep.subr.mxu0 %v509_v19  ;;  %555 = vmatpush1.msra.mxu1 %v508_v20 }
  0x38   :  { %2110 = vmatmul.mubr.msk.f32.gmra.mxu0 %vm85_vm0, %v310_v12  ;;  %556 = vmatprep.subr.mxu1 %v507_v21  ;;  %v2652_v4 = vrot.slane %v455_v61, %v2638_v56  ;;  %v2655_v7 = vrot.slane %v459_v62, %v2638_v56 }
  0x39   :  { %725 = vmatpush1.msra.mxu0 %v508_v20  ;;  %557 = vmatpush1.msra.mxu1 %v506_v22 }
  0x3a   :  { %726 = vmatprep.subr.mxu0 %v507_v21  ;;  %558 = vmatprep.subr.mxu1 %v505_v23 }
  0x3b   :  { %727 = vmatpush1.msra.mxu0 %v506_v22  ;;  %559 = vmatpush1.msra.mxu1 %v504_v24 }
  0x3c   :  { %728 = vmatprep.subr.mxu0 %v505_v23  ;;  %560 = vmatprep.subr.mxu1 %v503_v25 }
  0x3d   :  { %729 = vmatpush1.msra.mxu0 %v504_v24  ;;  %561 = vmatpush1.msra.mxu1 %v502_v26 }
  0x3e   :  { %730 = vmatprep.subr.mxu0 %v503_v25  ;;  %562 = vmatprep.subr.mxu1 %v501_v27 }
  0x3f   :  { %731 = vmatpush1.msra.mxu0 %v502_v26  ;;  %563 = vmatpush1.msra.mxu1 %v500_v28  ;;  %v2683_v26 = vld [vmem:[%s3684_s1 + $0x18] sm:$0xff] }
  0x40   :  { %732 = vmatprep.subr.mxu0 %v501_v27  ;;  %564 = vmatprep.subr.mxu1 %v499_v29 }
  0x41   :  { %733 = vmatpush1.msra.mxu0 %v500_v28  ;;  %565 = vmatpush1.msra.mxu1 %v498_v30 }
  0x42   :  { %734 = vmatprep.subr.mxu0 %v499_v29  ;;  %566 = vmatprep.subr.mxu1 %v497_v31 }
  0x43   :  { %735 = vmatpush1.msra.mxu0 %v498_v30  ;;  %567 = vmatpush1.msra.mxu1 %v496_v32 }
  0x44   :  { %736 = vmatprep.subr.mxu0 %v497_v31  ;;  %568 = vmatprep.subr.mxu1 %v495_v33  ;;  %v2692_v31 = vld [vmem:[%s3684_s1 + $0x10] sm:$0xff] }
  0x45   :  { %737 = vmatpush1.msra.mxu0 %v496_v32  ;;  %569 = vmatpush1.msra.mxu1 %v494_v34 }
  0x46   :  { %738 = vmatprep.subr.mxu0 %v495_v33  ;;  %570 = vmatprep.subr.mxu1 %v493_v35 }
  0x47   :  { %739 = vmatpush1.msra.mxu0 %v494_v34  ;;  %571 = vmatpush1.msra.mxu1 %v492_v36 }
  0x48   :  { %740 = vmatprep.subr.mxu0 %v493_v35  ;;  %572 = vmatprep.subr.mxu1 %v491_v37 }
  0x49   :  { %741 = vmatpush1.msra.mxu0 %v492_v36  ;;  %573 = vmatpush1.msra.mxu1 %v490_v38 }
  0x4a   :  { %742 = vmatprep.subr.mxu0 %v491_v37  ;;  %602 = vmatprep.subr.mxu1 %v525_v39 }
  0x4b   :  { %743 = vmatpush1.msra.mxu0 %v490_v38  ;;  %603 = vmatpush2.msra.mxu1 %v524_v40  ;;  %v2702_v38 = vld [vmem:[%s3684_s1 + $0x28] sm:$0xff] }
  0x4c   :  { %772 = vmatprep.subr.mxu0 %v525_v39  ;;  %604 = vmatprep.subr.mxu1 %v523_v41 }
  0x4d   :  { %605 = vmatpush2.msra.mxu1 %v522_v42  ;;  %773 = vmatpush2.msra.mxu0 %v524_v40 }
  0x4e   :  { %774 = vmatprep.subr.mxu0 %v523_v41 }
  0x4f   :  { %775 = vmatpush2.msra.mxu0 %v522_v42 }
  0xd4   :  { %v167_v43 = vpop.f32.mrf.mxu0  ;;  %v277_v44 = vpop.f32.mrf.mxu1 }
  0xd5   :  { %v278_v1 = vadd.f32 %v277_v44, %v167_v43  ;;  %v2713_v44 = vld [vmem:[%s3684_s1 + $0x20] sm:$0xff] }
  0xd6   :  { %v169_v45 = vpop.f32.mrf.mxu0  ;;  %v279_v46 = vpop.f32.mrf.mxu1 }
  0xd7   :  { %v280_v5 = vadd.f32 %v279_v46, %v169_v45 }
  0xd8   :  { %v173_v47 = vpop.f32.mrf.mxu0  ;;  %v283_v49 = vpop.f32.mrf.mxu1 }
  0xd9   :  { %v284_v10 = vadd.f32 %v283_v49, %v173_v47 }
  0xda   :  { %v175_v50 = vpop.f32.mrf.mxu0  ;;  %v285_v53 = vpop.f32.mrf.mxu1 }
  0xdb   :  { %v286_v15 = vadd.f32 %v285_v53, %v175_v50 }
  0xdc   :  { %v179_v51 = vpop.f32.mrf.mxu0 }
  0xdd   :  { %v289_v58 = vpop.f32.mrf.mxu1 }
  0xde   :  { %v181_v54 = vpop.f32.mrf.mxu0  ;;  %v290_v21 = vadd.f32 %v289_v58, %v179_v51  ;;  %v2723_v51 = vld [vmem:[%s3684_s1 + $0x38] sm:$0xff] }
  0xdf   :  { %v291_v63 = vpop.f32.mrf.mxu1 }
  0xe0   :  { %v185_v55 = vpop.f32.mrf.mxu0  ;;  %v292_v28 = vadd.f32 %v291_v63, %v181_v54 }
  0xe1   :  { %v295_v8 = vpop.f32.mrf.mxu1 }
  0xe2   :  { %v187_v59 = vpop.f32.mrf.mxu0  ;;  %v296_v34 = vadd.f32 %v295_v8, %v185_v55 }
  0xe3   :  { %v297_v19 = vpop.f32.mrf.mxu1 }
  0xe4   :  { %v191_v60 = vpop.f32.mrf.mxu0  ;;  %v298_v41 = vadd.f32 %v297_v19, %v187_v59 }
  0xe5   :  { %v301_v32 = vpop.f32.mrf.mxu1 }
  0xe6   :  { %v193_v0 = vpop.f32.mrf.mxu0  ;;  %v302_v47 = vadd.f32 %v301_v32, %v191_v60  ;;  %v2734_v60 = vld [vmem:[%s3684_s1 + $0x30] sm:$0xff] }
  0xe7   :  { %v303_v45 = vpop.f32.mrf.mxu1 }
  0xe8   :  { %v411_v2 = vpop.f32.mrf.mxu0  ;;  %v304_v55 = vadd.f32 %v303_v45, %v193_v0  ;;  %v2744_v0 = vld [vmem:[%s3684_s1 + $0x48] sm:$0xf] }
  0xe9   :  { %v440_v6 = vadd.f32 %v411_v2, %v278_v1 }
  0xea   :  { %v413_v9 = vpop.f32.mrf.mxu0 }
  0xeb   :  { %v441_v11 = vadd.f32 %v413_v9, %v280_v5  ;;  %v2658_v12 = vadd.f32 %v2652_v4, %v440_v6  ;;  %v2755_v6 = vld [vmem:[%s3684_s1 + $0x40] sm:$0xf] }
  0xec   :  { %v417_v14 = vpop.f32.mrf.mxu0 }
  0xed   :  { %v2671_v17 = vadd.f32 %v2655_v7, %v441_v11  ;;  %v442_v18 = vadd.f32 %v417_v14, %v284_v10  ;;  %v480_v24 = vmul.f32 %v2658_v12, %v2668_v16 }
  0xee   :  { %v419_v20 = vpop.f32.mrf.mxu0 }
  0xef   :  { %v481_v22 = vmul.f32 %v2671_v17, %v2663_v13  ;;  %v443_v23 = vadd.f32 %v419_v20, %v286_v15  ;;  %v2678_v25 = vadd.f32 %v2652_v4, %v442_v18 }
  0xf0   :  { %v423_v27 = vpop.f32.mrf.mxu0 }
  0xf1   :  { %v2686_v29 = vadd.f32 %v2655_v7, %v443_v23  ;;  %v444_v30 = vadd.f32 %v423_v27, %v290_v21  ;;  %2111 = vmatprep.mubr.msk.f32.mxu1 %vm526_vm1, %v481_v22  ;;  %v482_v40 = vmul.f32 %v2678_v25, %v2692_v31 }
  0xf2   :  { %v425_v33 = vpop.f32.mrf.mxu0  ;;  %607 = vmatmul.mubr.f32.vlgmr.msra.gmra.mxu1 %v480_v24 }
  0xf3   :  { %v483_v35 = vmul.f32 %v2686_v29, %v2683_v26  ;;  %v445_v36 = vadd.f32 %v425_v33, %v292_v28  ;;  %v2697_v37 = vadd.f32 %v2652_v4, %v444_v30 }
  0xf4   :  { %v429_v39 = vpop.f32.mrf.mxu0 }
  0xf5   :  { %v2707_v42 = vadd.f32 %v2655_v7, %v445_v36  ;;  %v446_v43 = vadd.f32 %v429_v39, %v296_v34  ;;  %2112 = vmatprep.mubr.msk.f32.mxu1 %vm526_vm1, %v483_v35  ;;  %v484_v54 = vmul.f32 %v2697_v37, %v2713_v44 }
  0xf6   :  { %v431_v46 = vpop.f32.mrf.mxu0  ;;  %613 = vmatmul.mubr.f32.gmra.mxu1 %v482_v40 }
  0xf7   :  { %v485_v48 = vmul.f32 %v2707_v42, %v2702_v38  ;;  %v447_v49 = vadd.f32 %v431_v46, %v298_v41  ;;  %v2718_v50 = vadd.f32 %v2652_v4, %v446_v43 }
  0xf8   :  { %v435_v53 = vpop.f32.mrf.mxu0 }
  0xf9   :  { %v2728_v58 = vadd.f32 %v2655_v7, %v447_v49  ;;  %v448_v59 = vadd.f32 %v435_v53, %v302_v47  ;;  %2113 = vmatprep.mubr.msk.f32.mxu1 %vm526_vm1, %v485_v48  ;;  %v486_v2 = vmul.f32 %v2718_v50, %v2734_v60 }
  0xfa   :  { %v437_v61 = vpop.f32.mrf.mxu0  ;;  %619 = vmatmul.mubr.f32.gmra.mxu1 %v484_v54 }
  0xfb   :  { %v487_v62 = vmul.f32 %v2728_v58, %v2723_v51  ;;  %v449_v63 = vadd.f32 %v437_v61, %v304_v55  ;;  %v2739_v1 = vadd.f32 %v2652_v4, %v448_v59 }
  0xfd   :  { %v2749_v5 = vadd.f32 %v2655_v7, %v449_v63  ;;  %2114 = vmatprep.mubr.msk.f32.mxu1 %vm526_vm1, %v487_v62  ;;  %v488_v8 = vmul.f32 %v2739_v1, %v2755_v6 }
  0xfe   :  { %625 = vmatmul.mubr.f32.gmra.mxu1 %v486_v2 }
  0xff   :  { %v489_v4 = vmul.f32 %v2749_v5, %v2744_v0 }
 0x101   :  { %2115 = vmatprep.mubr.msk.f32.mxu1 %vm526_vm1, %v489_v4 }
 0x102   :  { %631 = vmatmul.mubr.f32.gmra.mxu1 %v488_v8 }
 0x1b2   :  { %v608_v7 = vpop.f32.mrf.mxu1 }
 0x1b4   :  { %v610_v9 = vpop.f32.mrf.mxu1 }
 0x1b5   :  { %v649_v21 = vsel %vm526_vm1, %v610_v9, 0.0 }
 0x1b6   :  { %v614_v10 = vpop.f32.mrf.mxu1 }
 0x1b7   :  { %v637_v19 = vadd.f32 %v614_v10, %v608_v7 }
 0x1b8   :  { %v616_v11 = vpop.f32.mrf.mxu1 }
 0x1b9   :  { %v650_v18 = vsel %vm526_vm1, %v616_v11, 0.0 }
 0x1ba   :  { %v620_v14 = vpop.f32.mrf.mxu1  ;;  %v651_v23 = vadd.f32 %v650_v18, %v649_v21 }
 0x1bb   :  { %v638_v24 = vadd.f32 %v637_v19, %v620_v14 }
 0x1bc   :  { %v622_v15 = vpop.f32.mrf.mxu1 }
 0x1bd   :  { %v652_v22 = vsel %vm526_vm1, %v622_v15, 0.0 }
 0x1be   :  { %v626_v20 = vpop.f32.mrf.mxu1  ;;  %v653_v30 = vadd.f32 %v652_v22, %v651_v23 }
 0x1bf   :  { %v639_v32 = vadd.f32 %v638_v24, %v626_v20 }
 0x1c0   :  { %v628_v27 = vpop.f32.mrf.mxu1 }
 0x1c1   :  { %v654_v28 = vsel %vm526_vm1, %v628_v27, 0.0 }
 0x1c2   :  { %v632_v33 = vpop.f32.mrf.mxu1  ;;  %v655_v35 = vadd.f32 %v654_v28, %v653_v30 }
 0x1c3   :  { %v641_v34 = vsel %vm640_vm3, %v632_v33, 0.0 }
 0x1c4   :  { %v642_v36 = vadd.f32 %v641_v34, %v639_v32  ;;  %v634_v39 = vpop.f32.mrf.mxu1 }
 0x1c5   :  { %v657_v40 = vsel %vm656_vm2, %v634_v39, 0.0  ;;  %v2149_v39 = vld [vmem:[%s3685_s5 + $0x200] sm:$0xff] }
 0x1c6   :  { %v643_v41 = vrot.slane %v642_v36, 4  ;;  %v658_v43 = vadd.f32 %v657_v40, %v655_v35  ;;  %v2151_v35 = vld [vmem:[%s3685_s5 + $0x210] sm:$0xff]  ;;  %v2148_v40 = vld [vmem:[%s3685_s5 + $0x1f8] sm:$0xff] }
 0x1c8   :  { %v644_v45 = vadd.f32 %v643_v41, %v642_v36  ;;  %v659_v46 = vrot.slane %v658_v43, 4  ;;  %v2150_v36 = vld [vmem:[%s3685_s5 + $0x208] sm:$0xff]  ;;  %v985_v41 = vld [vmem:[%s3685_s5 + $0xf8] sm:$0xff] }
 0x1c9   :  { %1185 = vmatprep.subr.mxu0 %v985_v41  ;;  %v964_v41 = vld [vmem:[%s3685_s5 + $0x50] sm:$0xff] }
 0x1ca   :  { %v645_v47 = vrot.slane %v644_v45, 2  ;;  %v660_v48 = vadd.f32 %v659_v46, %v658_v43  ;;  %v2147_v43 = vld [vmem:[%s3685_s5 + $0x1f0] sm:$0xff]  ;;  %v983_v46 = vld [vmem:[%s3685_s5 + $0xe8] sm:$0xff] }
 0x1cc   :  { %v646_v49 = vadd.f32 %v645_v47, %v644_v45  ;;  %v661_v53 = vrot.slane %v660_v48, 2  ;;  %v984_v45 = vld [vmem:[%s3685_s5 + $0xf0] sm:$0xff]  ;;  %v2146_v47 = vld [vmem:[%s3685_s5 + $0x1e8] sm:$0xff] }
 0x1ce   :  { %v647_v54 = vrot.slane %v646_v49, 1  ;;  %v662_v55 = vadd.f32 %v661_v53, %v660_v48  ;;  %v982_v48 = vld [vmem:[%s3685_s5 + $0xe0] sm:$0xff]  ;;  %v981_v53 = vld [vmem:[%s3685_s5 + $0xd8] sm:$0xff] }
 0x1d0   :  { %v648_v59 = vadd.f32 %v647_v54, %v646_v49  ;;  %v663_v61 = vrot.slane %v662_v55, 1  ;;  %v2145_v49 = vld [vmem:[%s3685_s5 + $0x1e0] sm:$0xff]  ;;  %v980_v54 = vld [vmem:[%s3685_s5 + $0xd0] sm:$0xff] }
 0x1d2   :  { %v665_v62 = vmul.f32 0.001953125, %v648_v59  ;;  %v664_v63 = vadd.f32 %v663_v61, %v662_v55  ;;  %v2144_v55 = vld [vmem:[%s3685_s5 + $0x1d8] sm:$0xff]  ;;  %v979_v59 = vld [vmem:[%s3685_s5 + $0xc8] sm:$0xff]  ;;  %v2143_v61 = vld [vmem:[%s3685_s5 + $0x1d0] sm:$0xff] }
 0x1d4   :  { %v666_v2 = vmul.f32 0.001953125, %v664_v63  ;;  %v2769_v4 = vsub.f32 %v2658_v12, %v665_v62  ;;  %v2780_v10 = vsub.f32 %v2678_v25, %v665_v62  ;;  %v2792_v18 = vsub.f32 %v2697_v37, %v665_v62  ;;  %v2142_v63 = vld [vmem:[%s3685_s5 + $0x1c8] sm:$0xff] }
 0x1d5   :  { %v2804_v22 = vsub.f32 %v2718_v50, %v665_v62  ;;  %v2815_v28 = vsub.f32 %v2739_v1, %v665_v62  ;;  %v2152_v1 = vld [vmem:[%s3685_s5 + $0x218] sm:$0xff]  ;;  %v978_v62 = vld [vmem:[%s3685_s5 + $0xc0] sm:$0xff] }
 0x1d6   :  { %v2772_v8 = vsub.f32 %v2671_v17, %v666_v2  ;;  %v2775_v7 = vsub.f32 %v2686_v29, %v666_v2  ;;  %v677_v9 = vmul.f32 %v2769_v4, %v2668_v16  ;;  %v2787_v12 = vsub.f32 %v2707_v42, %v666_v2  ;;  %1044 = vmatprep.subr.mxu1 %v2152_v1  ;;  %v2131_v1 = vld [vmem:[%s3685_s5 + $0x170] sm:$0xff] }
 0x1d7   :  { %v679_v29 = vmul.f32 %v2780_v10, %v2692_v31  ;;  %v2798_v20 = vsub.f32 %v2728_v58, %v666_v2  ;;  %v681_v21 = vmul.f32 %v2792_v18, %v2713_v44  ;;  %v2809_v24 = vsub.f32 %v2749_v5, %v666_v2  ;;  %1045 = vmatpush1.msra.mxu1 %v2151_v35  ;;  %v977_v2 = vld [vmem:[%s3685_s5 + $0xb8] sm:$0xff]  ;;  %v966_v35 = vld [vmem:[%s3685_s5 + $0x60] sm:$0xff] }
 0x1d8   :  { %v678_v11 = vmul.f32 %v2772_v8, %v2663_v13  ;;  %v680_v14 = vmul.f32 %v2775_v7, %v2683_v26  ;;  %v687_v15 = vmul.f32 %v677_v9, %v677_v9  ;;  %v682_v19 = vmul.f32 %v2787_v12, %v2702_v38  ;;  %1046 = vmatprep.subr.mxu1 %v2150_v36  ;;  %v2141_v9 = vld [vmem:[%s3685_s5 + $0x1c0] sm:$0xff]  ;;  %v2130_v36 = vld [vmem:[%s3685_s5 + $0x168] sm:$0xff] }
 0x1d9   :  { %v689_v42 = vmul.f32 %v679_v29, %v679_v29  ;;  %v684_v23 = vmul.f32 %v2798_v20, %v2723_v51  ;;  %v691_v58 = vmul.f32 %v681_v21, %v681_v21  ;;  %v683_v27 = vmul.f32 %v2804_v22, %v2734_v60  ;;  %1047 = vmatpush1.msra.mxu1 %v2149_v39  ;;  %v974_v29 = vld [vmem:[%s3685_s5 + $0xa0] sm:$0xff]  ;;  %v972_v21 = vld [vmem:[%s3685_s5 + $0x90] sm:$0xff]  ;;  %v965_v39 = vld [vmem:[%s3685_s5 + $0x58] sm:$0xff] }
 0x1da   :  { %v688_v17 = vmul.f32 %v678_v11, %v678_v11  ;;  %v690_v25 = vmul.f32 %v680_v14, %v680_v14  ;;  %v692_v37 = vmul.f32 %v682_v19, %v682_v19  ;;  %v686_v50 = vmul.f32 %v2809_v24, %v2744_v0  ;;  %1048 = vmatprep.subr.mxu1 %v2148_v40  ;;  %v976_v11 = vld [vmem:[%s3685_s5 + $0xb0] sm:$0xff]  ;;  %v2140_v14 = vld [vmem:[%s3685_s5 + $0x1b8] sm:$0xff]  ;;  %v2129_v40 = vld [vmem:[%s3685_s5 + $0x160] sm:$0xff] }
 0x1db   :  { %v694_v30 = vmul.f32 %v684_v23, %v684_v23  ;;  %v693_v32 = vmul.f32 %v683_v27, %v683_v27  ;;  %v685_v5 = vmul.f32 %v2815_v28, %v2755_v6  ;;  %1049 = vmatpush1.msra.mxu1 %v2147_v43  ;;  %v973_v19 = vld [vmem:[%s3685_s5 + $0x98] sm:$0xff]  ;;  %v971_v23 = vld [vmem:[%s3685_s5 + $0x88] sm:$0xff]  ;;  %v970_v27 = vld [vmem:[%s3685_s5 + $0x80] sm:$0xff] }
 0x1dc   :  { %2116 = vmatprep.mubr.msk.f32.mxu0 %vm526_vm1, %v688_v17  ;;  %v696_v33 = vmul.f32 %v686_v50, %v686_v50  ;;  %1050 = vmatprep.subr.mxu1 %v2146_v47  ;;  %v975_v17 = vld [vmem:[%s3685_s5 + $0xa8] sm:$0xff]  ;;  %v969_v50 = vld [vmem:[%s3685_s5 + $0x78] sm:$0xff]  ;;  %v962_v47 = vld [vmem:[%s3685_s5 + $0x40] sm:$0xff] }
 0x1dd   :  { %777 = vmatmul.mubr.f32.vlgmr.msra.gmra.mxu0 %v687_v15  ;;  %v695_v34 = vmul.f32 %v685_v5, %v685_v5  ;;  %1051 = vmatpush1.msra.mxu1 %v2145_v49  ;;  %v2139_v15 = vld [vmem:[%s3685_s5 + $0x1b0] sm:$0xff]  ;;  %v2128_v43 = vld [vmem:[%s3685_s5 + $0x158] sm:$0xff] }
 0x1de   :  { %2117 = vmatprep.mubr.msk.f32.mxu0 %vm526_vm1, %v690_v25  ;;  %1186 = vmatpush1.msra.mxu0 %v984_v45  ;;  %v2138_v25 = vld [vmem:[%s3685_s5 + $0x1a8] sm:$0xff]  ;;  %v968_v5 = vld [vmem:[%s3685_s5 + $0x70] sm:$0xff]  ;;  %v961_v49 = vld [vmem:[%s3685_s5 + $0x38] sm:$0xff] }
 0x1df   :  { %1187 = vmatprep.subr.mxu0 %v983_v46  ;;  %1052 = vmatprep.subr.mxu1 %v2144_v55  ;;  %v963_v45 = vld [vmem:[%s3685_s5 + $0x48] sm:$0xff]  ;;  %v2127_v46 = vld [vmem:[%s3685_s5 + $0x150] sm:$0xff]  ;;  %v2124_v55 = vld [vmem:[%s3685_s5 + $0x138] sm:$0xff] }
 0x1e0   :  { %1188 = vmatpush1.msra.mxu0 %v982_v48  ;;  %1053 = vmatpush1.msra.mxu1 %v2143_v61  ;;  %v2126_v48 = vld [vmem:[%s3685_s5 + $0x148] sm:$0xff]  ;;  %v2123_v61 = vld [vmem:[%s3685_s5 + $0x130] sm:$0xff] }
 0x1e1   :  { %783 = vmatmul.mubr.f32.gmra.mxu0 %v689_v42  ;;  %1189 = vmatprep.subr.mxu0 %v981_v53  ;;  %v2137_v42 = vld [vmem:[%s3685_s5 + $0x1a0] sm:$0xff] }
 0x1e2   :  { %2118 = vmatprep.mubr.msk.f32.mxu0 %vm526_vm1, %v692_v37  ;;  %1190 = vmatpush1.msra.mxu0 %v980_v54  ;;  %v2136_v37 = vld [vmem:[%s3685_s5 + $0x198] sm:$0xff]  ;;  %v2125_v53 = vld [vmem:[%s3685_s5 + $0x140] sm:$0xff]  ;;  %v960_v54 = vld [vmem:[%s3685_s5 + $0x30] sm:$0xff] }
 0x1e3   :  { %1191 = vmatprep.subr.mxu0 %v979_v59  ;;  %1054 = vmatprep.subr.mxu1 %v2142_v63  ;;  %v959_v59 = vld [vmem:[%s3685_s5 + $0x28] sm:$0xff] }
 0x1e4   :  { %1192 = vmatpush1.msra.mxu0 %v978_v62  ;;  %1055 = vmatpush1.msra.mxu1 %v2141_v9  ;;  %v958_v62 = vld [vmem:[%s3685_s5 + $0x20] sm:$0xff]  ;;  %v2122_v63 = vld [vmem:[%s3685_s5 + $0x128] sm:$0xff] }
 0x1e5   :  { %789 = vmatmul.mubr.f32.gmra.mxu0 %v691_v58  ;;  %1193 = vmatprep.subr.mxu0 %v977_v2  ;;  %v2135_v58 = vld [vmem:[%s3685_s5 + $0x190] sm:$0xff]  ;;  %v957_v2 = vld [vmem:[%s3685_s5 + $0x18] sm:$0xff]  ;;  %v2121_v9 = vld [vmem:[%s3685_s5 + $0x120] sm:$0xff] }
 0x1e6   :  { %2119 = vmatprep.mubr.msk.f32.mxu0 %vm526_vm1, %v694_v30  ;;  %1194 = vmatpush1.msra.mxu0 %v976_v11  ;;  %v2134_v30 = vld [vmem:[%s3685_s5 + $0x188] sm:$0xff]  ;;  %v956_v11 = vld [vmem:[%s3685_s5 + $0x10] sm:$0xff] }
 0x1e7   :  { %1056 = vmatprep.subr.mxu1 %v2140_v14  ;;  %1195 = vmatprep.subr.mxu0 %v975_v17  ;;  %v2156_v14 = vld [vmem:[%s3685_s5 + $0x238] sm:$0xff]  ;;  %v955_v17 = vld [vmem:[%s3685_s5 + $0x8] sm:$0xff] }
 0x1e8   :  { %1057 = vmatpush1.msra.mxu1 %v2139_v15  ;;  %1196 = vmatpush1.msra.mxu0 %v974_v29  ;;  %v2155_v15 = vld [vmem:[%s3685_s5 + $0x230] sm:$0xff]  ;;  %v954_v29 = vld [vmem:[%s3685_s5] sm:$0xff] }
 0x1e9   :  { %795 = vmatmul.mubr.f32.gmra.mxu0 %v693_v32  ;;  %1058 = vmatprep.subr.mxu1 %v2138_v25  ;;  %v2133_v32 = vld [vmem:[%s3685_s5 + $0x180] sm:$0xff]  ;;  %v2154_v25 = vld [vmem:[%s3685_s5 + $0x228] sm:$0xff] }
 0x1ea   :  { %2120 = vmatprep.mubr.msk.f32.mxu0 %vm526_vm1, %v696_v33  ;;  %1197 = vmatprep.subr.mxu0 %v973_v19  ;;  %v2132_v33 = vld [vmem:[%s3685_s5 + $0x178] sm:$0xff]  ;;  %v2153_v19 = vld [vmem:[%s3685_s5 + $0x220] sm:$0xff] }
 0x1eb   :  { %1059 = vmatpush1.msra.mxu1 %v2137_v42  ;;  %1198 = vmatpush1.msra.mxu0 %v972_v21  ;;  %v989_v42 = vld [vmem:[%s3685_s5 + $0x118] sm:$0xff] }
 0x1ec   :  { %1060 = vmatprep.subr.mxu1 %v2136_v37  ;;  %1199 = vmatprep.subr.mxu0 %v971_v23  ;;  %v2198_v21 = vld [vmem:[%s3685_s5 + $0x338] sm:$0xff]  ;;  %v988_v37 = vld [vmem:[%s3685_s5 + $0x110] sm:$0xff]  ;;  %v987_v23 = vld [vmem:[%s3685_s5 + $0x108] sm:$0xff] }
 0x1ed   :  { %801 = vmatmul.mubr.f32.gmra.mxu0 %v695_v34  ;;  %1061 = vmatpush1.msra.mxu1 %v2135_v58  ;;  %v967_v34 = vld [vmem:[%s3685_s5 + $0x68] sm:$0xff]  ;;  %v986_v58 = vld [vmem:[%s3685_s5 + $0x100] sm:$0xff] }
 0x1ee   :  { %1200 = vmatpush1.msra.mxu0 %v970_v27  ;;  %1062 = vmatprep.subr.mxu1 %v2134_v30  ;;  %v2228_v27 = vld [vmem:[#allocation2] sm:$0xff] }
 0x1ef   :  { %1201 = vmatprep.subr.mxu0 %v969_v50  ;;  %1063 = vmatpush1.msra.mxu1 %v2133_v32  ;;  %919 = vst.msk [vmem:[#allocation2 + $0x58] sm:$0xf0] %vm918_vm4, %v2228_v27 }
 0x1f0   :  { %1202 = vmatpush1.msra.mxu0 %v968_v5  ;;  %1064 = vmatprep.subr.mxu1 %v2132_v33 }
 0x1f1   :  { %1203 = vmatprep.subr.mxu0 %v967_v34  ;;  %1065 = vmatpush1.msra.mxu1 %v2131_v1 }
 0x1f2   :  { %1204 = vmatpush1.msra.mxu0 %v966_v35  ;;  %1066 = vmatprep.subr.mxu1 %v2130_v36 }
 0x1f3   :  { %1205 = vmatprep.subr.mxu0 %v965_v39  ;;  %1067 = vmatpush1.msra.mxu1 %v2129_v40 }
 0x1f4   :  { %1206 = vmatpush1.msra.mxu0 %v964_v41  ;;  %1068 = vmatprep.subr.mxu1 %v2128_v43 }
 0x1f5   :  { %1207 = vmatprep.subr.mxu0 %v963_v45  ;;  %1069 = vmatpush1.msra.mxu1 %v2127_v46 }
 0x1f6   :  { %1208 = vmatpush1.msra.mxu0 %v962_v47  ;;  %1070 = vmatprep.subr.mxu1 %v2126_v48 }
 0x1f7   :  { %1209 = vmatprep.subr.mxu0 %v961_v49  ;;  %1071 = vmatpush1.msra.mxu1 %v2125_v53 }
 0x1f8   :  { %1210 = vmatpush1.msra.mxu0 %v960_v54  ;;  %1072 = vmatprep.subr.mxu1 %v2124_v55 }
 0x1f9   :  { %1211 = vmatprep.subr.mxu0 %v959_v59  ;;  %1073 = vmatpush1.msra.mxu1 %v2123_v61 }
 0x1fa   :  { %1212 = vmatpush1.msra.mxu0 %v958_v62  ;;  %1074 = vmatprep.subr.mxu1 %v2122_v63 }
 0x1fb   :  { %1213 = vmatprep.subr.mxu0 %v957_v2  ;;  %1075 = vmatpush1.msra.mxu1 %v2121_v9 }
 0x1fc   :  { %1214 = vmatpush1.msra.mxu0 %v956_v11  ;;  %1104 = vmatprep.subr.mxu1 %v2156_v14 }
 0x1fd   :  { %1215 = vmatprep.subr.mxu0 %v955_v17  ;;  %1105 = vmatpush2.msra.mxu1 %v2155_v15 }
 0x1fe   :  { %1216 = vmatpush1.msra.mxu0 %v954_v29  ;;  %1106 = vmatprep.subr.mxu1 %v2154_v25 }
 0x1ff   :  { %1245 = vmatprep.subr.mxu0 %v989_v42  ;;  %1107 = vmatpush2.msra.mxu1 %v2153_v19 }
 0x200   :  { %1246 = vmatpush2.msra.mxu0 %v988_v37  ;;  %1359 = vmatprep.subr.mxu1 %v2198_v21 }
 0x201   :  { %1247 = vmatprep.subr.mxu0 %v987_v23 }
 0x202   :  { %1248 = vmatpush2.msra.mxu0 %v986_v58 }
 0x29d   :  { %v778_v30 = vpop.f32.mrf.mxu0 }
 0x29f   :  { %v780_v50 = vpop.f32.mrf.mxu0 }
 0x2a0   :  { %v818_v39 = vsel %vm526_vm1, %v780_v50, 0.0  ;;  %v855_v50 = vsub.s32 5, %v2635_v52 }
 0x2a1   :  { %v784_v32 = vpop.f32.mrf.mxu0 }
 0x2a2   :  { %v807_v35 = vadd.f32 %v784_v32, %v778_v30  ;;  %v3049_v30 = vsub.s32 1, %v2635_v52  ;;  %v3053_v32 = vsub.s32 2, %v2635_v52 }
 0x2a3   :  { %v786_v5 = vpop.f32.mrf.mxu0 }
 0x2a4   :  { %v819_v1 = vsel %vm526_vm1, %v786_v5, 0.0  ;;  %v883_v5 = vsub.s32 6, %v2635_v52 }
 0x2a5   :  { %v790_v33 = vpop.f32.mrf.mxu0  ;;  %v820_v41 = vadd.f32 %v819_v1, %v818_v39  ;;  %v880_v1 = vrot.slane %v2643_v3, %v3053_v32 }
 0x2a6   :  { %v808_v43 = vadd.f32 %v807_v35, %v790_v33  ;;  %v852_v33 = vrot.slane %v2643_v3, %v3049_v30  ;;  %v884_v35 = vrot.slane %v2643_v3, %v883_v5 }
 0x2a7   :  { %v792_v34 = vpop.f32.mrf.mxu0 }
 0x2a8   :  { %v821_v40 = vsel %vm526_vm1, %v792_v34, 0.0  ;;  %v856_v34 = vrot.slane %v2643_v3, %v855_v50 }
 0x2a9   :  { %v796_v36 = vpop.f32.mrf.mxu0  ;;  %v822_v47 = vadd.f32 %v821_v40, %v820_v41  ;;  %v890_v41 = vrot.slane %v880_v1, %v3053_v32 }
 0x2aa   :  { %v809_v48 = vadd.f32 %v808_v43, %v796_v36  ;;  %v862_v36 = vrot.slane %v852_v33, %v3049_v30  ;;  %v866_v40 = vrot.slane %v856_v34, %v3049_v30 }
 0x2ab   :  { %v798_v45 = vpop.f32.mrf.mxu0 }
 0x2ac   :  { %v823_v46 = vsel %vm526_vm1, %v798_v45, 0.0 }
 0x2ad   :  { %v802_v49 = vpop.f32.mrf.mxu0  ;;  %v824_v54 = vadd.f32 %v823_v46, %v822_v47 }
 0x2ae   :  { %v810_v53 = vsel %vm640_vm3, %v802_v49, 0.0  ;;  %v894_v49 = vrot.slane %v884_v35, %v3053_v32 }
 0x2af   :  { %v811_v55 = vadd.f32 %v810_v53, %v809_v48  ;;  %v804_v59 = vpop.f32.mrf.mxu0 }
 0x2b0   :  { %v825_v61 = vsel %vm656_vm2, %v804_v59, 0.0 }
 0x2b1   :  { %v812_v62 = vrot.slane %v811_v55, 4  ;;  %v826_v63 = vadd.f32 %v825_v61, %v824_v54 }
 0x2b3   :  { %v813_v2 = vadd.f32 %v812_v62, %v811_v55  ;;  %v827_v9 = vrot.slane %v826_v63, 4 }
 0x2b5   :  { %v814_v11 = vrot.slane %v813_v2, 2  ;;  %v828_v14 = vadd.f32 %v827_v9, %v826_v63 }
 0x2b7   :  { %v815_v17 = vadd.f32 %v814_v11, %v813_v2  ;;  %v829_v15 = vrot.slane %v828_v14, 2 }
 0x2b9   :  { %v816_v29 = vrot.slane %v815_v17, 1  ;;  %v830_v25 = vadd.f32 %v829_v15, %v828_v14 }
 0x2bb   :  { %v817_v19 = vadd.f32 %v816_v29, %v815_v17  ;;  %v831_v42 = vrot.slane %v830_v25, 1 }
 0x2bd   :  { %v833_v21 = vmul.f32 0.001953125, %v817_v19  ;;  %v832_v37 = vadd.f32 %v831_v42, %v830_v25 }
 0x2bf   :  { %v835_v23 = vadd.f32 1e-05, %v833_v21  ;;  %v834_v58 = vmul.f32 0.001953125, %v832_v37 }
 0x2c1   :  { %2220 = vrsqrt.f32 %v835_v23  ;;  %v836_v27 = vadd.f32 1e-05, %v834_v58 }
 0x2c3   :  { %2222 = vrsqrt.f32 %v836_v27 }
 0x2ce   :  { %v2221_v39 = vpop.eup %2220 }
 0x2cf   :  { %v839_v43 = vmul.f32 %v2221_v39, %v2769_v4  ;;  %v841_v45 = vmul.f32 %v2221_v39, %v2780_v10  ;;  %v843_v46 = vmul.f32 %v2221_v39, %v2792_v18  ;;  %v845_v47 = vmul.f32 %v2221_v39, %v2804_v22 }
 0x2d0   :  { %v2223_v48 = vpop.eup %2222  ;;  %v847_v3 = vmul.f32 %v2221_v39, %v2815_v28 }
 0x2d1   :  { %v840_v53 = vmul.f32 %v2223_v48, %v2772_v8  ;;  %v867_v54 = vmul.f32 %v862_v36, %v839_v43  ;;  %v842_v55 = vmul.f32 %v2223_v48, %v2775_v7  ;;  %v869_v59 = vmul.f32 %v862_v36, %v841_v45  ;;  %v942_v43 = vld [vmem:[#allocation2] sm:$0x80] }
 0x2d2   :  { %v844_v61 = vmul.f32 %v2223_v48, %v2787_v12  ;;  %v871_v4 = vmul.f32 %v862_v36, %v843_v46  ;;  %v846_v10 = vmul.f32 %v2223_v48, %v2798_v20  ;;  %v873_v62 = vmul.f32 %v862_v36, %v845_v47 }
 0x2d3   :  { %v868_v18 = vmul.f32 %v866_v40, %v840_v53  ;;  %v895_v63 = vadd.f32 %v890_v41, %v867_v54  ;;  %v870_v22 = vmul.f32 %v866_v40, %v842_v55  ;;  %v897_v2 = vadd.f32 %v890_v41, %v869_v59  ;;  %v2194_v55 = vld [vmem:[%s3685_s5 + $0x318] sm:$0xff] }
 0x2d4   :  { %v872_v9 = vmul.f32 %v866_v40, %v844_v61  ;;  %v899_v11 = vadd.f32 %v890_v41, %v871_v4  ;;  %v874_v14 = vmul.f32 %v866_v40, %v846_v10  ;;  %v901_v28 = vadd.f32 %v890_v41, %v873_v62  ;;  %v2193_v4 = vld [vmem:[%s3685_s5 + $0x310] sm:$0xff]  ;;  %v2192_v10 = vld [vmem:[%s3685_s5 + $0x308] sm:$0xff] }
 0x2d5   :  { %v896_v17 = vadd.f32 %v894_v49, %v868_v18  ;;  %v905_v8 = vmax.f32 %v895_v63, 0.0  ;;  %v898_v15 = vadd.f32 %v894_v49, %v870_v22  ;;  %v907_v29 = vmax.f32 %v897_v2, 0.0  ;;  %v2191_v63 = vld [vmem:[%s3685_s5 + $0x300] sm:$0xff]  ;;  %v2190_v22 = vld [vmem:[%s3685_s5 + $0x2f8] sm:$0xff] }
 0x2d6   :  { %v900_v7 = vadd.f32 %v894_v49, %v872_v9  ;;  %v909_v25 = vmax.f32 %v899_v11, 0.0  ;;  %v902_v19 = vadd.f32 %v894_v49, %v874_v14  ;;  %v911_v12 = vmax.f32 %v901_v28, 0.0  ;;  %v2189_v14 = vld [vmem:[%s3685_s5 + $0x2f0] sm:$0xff]  ;;  %v2188_v28 = vld [vmem:[%s3685_s5 + $0x2e8] sm:$0xff] }
 0x2d7   :  { %v906_v42 = vmax.f32 %v896_v17, 0.0  ;;  %v3080_v20 = vmul.f32 %v905_v8, %v2668_v16  ;;  %v908_v21 = vmax.f32 %v898_v15, 0.0  ;;  %v3083_v37 = vmul.f32 %v907_v29, %v2692_v31  ;;  %v2187_v15 = vld [vmem:[%s3685_s5 + $0x2e0] sm:$0xff]  ;;  %v2186_v29 = vld [vmem:[%s3685_s5 + $0x2d8] sm:$0xff] }
 0x2d8   :  { %v910_v23 = vmax.f32 %v900_v7, 0.0  ;;  %v3086_v58 = vmul.f32 %v909_v25, %v2713_v44  ;;  %v912_v27 = vmax.f32 %v902_v19, 0.0  ;;  %v3089_v33 = vmul.f32 %v911_v12, %v2734_v60  ;;  %v2185_v12 = vld [vmem:[%s3685_s5 + $0x2d0] sm:$0xff] }
 0x2d9   :  { %v923_v34 = vmul.f32 %v906_v42, %v2663_v13  ;;  %932 = vst [vmem:[#allocation2 + $0x10] sm:$0xff] %v3080_v20  ;;  %v925_v1 = vmul.f32 %v908_v21, %v2683_v26  ;;  %v848_v44 = vmul.f32 %v2223_v48, %v2809_v24  ;;  %v875_v60 = vmul.f32 %v862_v36, %v847_v3  ;;  %v943_v13 = vld [vmem:[#allocation2 + $0x8] sm:$0x80]  ;;  %v2195_v3 = vld [vmem:[%s3685_s5 + $0x320] sm:$0xff] }
 0x2da   :  { %v927_v16 = vmul.f32 %v910_v23, %v2702_v38  ;;  %v929_v31 = vmul.f32 %v912_v27, %v2723_v51  ;;  %v1151_v38 = vrot.slane %v943_v13, 7  ;;  %v1149_v47 = vrot.slane %v3080_v20, 7  ;;  %v2197_v51 = vld [vmem:[%s3685_s5 + $0x330] sm:$0xff]  ;;  %v2183_v27 = vld [vmem:[%s3685_s5 + $0x2c0] sm:$0xff] }
 0x2db   :  { %933 = vst.msk [vmem:[#allocation2 + $0x18] sm:$0xff] %vm526_vm1, %v923_v34  ;;  %935 = vst.msk [vmem:[#allocation2 + $0x28] sm:$0xff] %vm526_vm1, %v925_v1  ;;  %v876_v35 = vmul.f32 %v866_v40, %v848_v44  ;;  %v903_v39 = vadd.f32 %v890_v41, %v875_v60  ;;  %v1148_v24 = vrot.slane %v942_v43, 7  ;;  %v2196_v41 = vld [vmem:[%s3685_s5 + $0x328] sm:$0xff]  ;;  %v1158_v11 = vrot.slane %v3086_v58, 7  ;;  %v2181_v13 = vld [vmem:[%s3685_s5 + $0x2b0] sm:$0xff] }
 0x2dc   :  { %937 = vst.msk [vmem:[#allocation2 + $0x38] sm:$0xff] %vm526_vm1, %v927_v16  ;;  %939 = vst.msk [vmem:[#allocation2 + $0x48] sm:$0xff] %vm526_vm1, %v929_v31  ;;  %v1162_v19 = vrot.slane %v3089_v33, 7  ;;  %v2182_v31 = vld [vmem:[%s3685_s5 + $0x2b8] sm:$0xff]  ;;  %v2180_v43 = vld [vmem:[%s3685_s5 + $0x2a8] sm:$0xff] }
 0x2dd   :  { %v904_v26 = vadd.f32 %v894_v49, %v876_v35  ;;  %v913_v45 = vmax.f32 %v903_v39, 0.0  ;;  %v1150_v61 = vsel %vm1147_vm5, %v1148_v24, %v1149_v47  ;;  %v2176_v24 = vld [vmem:[%s3685_s5 + $0x288] sm:$0xff] }
 0x2de   :  { %v1163_v60 = vsel %vm1147_vm5, %v1158_v11, %v1162_v19 }
 0x2df   :  { %v914_v36 = vmax.f32 %v904_v26, 0.0  ;;  %v930_v48 = vmul.f32 %v913_v45, %v2755_v6  ;;  %v2179_v45 = vld [vmem:[%s3685_s5 + $0x2a0] sm:$0xff] }
 0x2e1   :  { %v931_v54 = vmul.f32 %v914_v36, %v2744_v0  ;;  %940 = vst [vmem:[#allocation2 + $0x50] sm:$0xf] %v930_v48  ;;  %v1154_v0 = vrot.slane %v3083_v37, 7  ;;  %v2175_v36 = vld [vmem:[%s3685_s5 + $0x280] sm:$0xff]  ;;  %v2174_v48 = vld [vmem:[%s3685_s5 + $0x278] sm:$0xff] }
 0x2e2   :  { %v945_v46 = vld [vmem:[#allocation2 + $0x18] sm:$0xff]  ;;  %v3105_v53 = vld [vmem:[#allocation2 + $0x28] sm:$0xff] }
 0x2e3   :  { %2157 = vmatprep.mubr.msk.f32.mxu1 %vm526_vm1, %v945_v46  ;;  %v1152_v40 = vrot.slane %v945_v46, 7  ;;  %v1156_v49 = vrot.slane %v3105_v53, 7  ;;  %v3124_v59 = vld [vmem:[#allocation2 + $0x38] sm:$0xff]  ;;  %941 = vst.msk [vmem:[#allocation2 + $0x58] sm:$0xf] %vm656_vm2, %v931_v54  ;;  %v3146_v2 = vld [vmem:[#allocation2 + $0x48] sm:$0xff]  ;;  %v1155_v9 = vsel %vm1147_vm5, %v1149_v47, %v1154_v0  ;;  %v1159_v25 = vsel %vm1147_vm5, %v1154_v0, %v1158_v11 }
 0x2e4   :  { %1109 = vmatmul.mubr.f32.vlgmr.msra.gmra.mxu1 %v3080_v20  ;;  %v1160_v18 = vrot.slane %v3124_v59, 7  ;;  %v1164_v8 = vrot.slane %v3146_v2, 7  ;;  %v1281_v42 = vld [vmem:[#allocation2 + $0x18] sm:$0xfe]  ;;  %v2184_v20 = vld [vmem:[%s3685_s5 + $0x2c8] sm:$0xff]  ;;  %v1330_v1 = vrot.slane %v3105_v53, 1 }
 0x2e5   :  { %1360 = vmatpush1.msra.mxu1 %v2197_v51  ;;  %2158 = vmatprep.mubr.msk.f32.mxu1 %vm526_vm1, %v3105_v53  ;;  %v1153_v6 = vsel %vm1147_vm5, %v1151_v38, %v1152_v40  ;;  %v1157_v62 = vsel %vm1147_vm5, %v1152_v40, %v1156_v49  ;;  %v1329_v44 = vrot.slane %v1281_v42, 1  ;;  %v2178_v46 = vld [vmem:[%s3685_s5 + $0x298] sm:$0xff]  ;;  %v2177_v51 = vld [vmem:[%s3685_s5 + $0x290] sm:$0xff] }
 0x2e6   :  { %1361 = vmatprep.subr.mxu1 %v2196_v41  ;;  %2162 = vmatprep.mubr.msk.f32.mxu0 %vm526_vm1, %v1153_v6  ;;  %v1161_v17 = vsel %vm1147_vm5, %v1156_v49, %v1160_v18  ;;  %v1165_v23 = vsel %vm1147_vm5, %v1160_v18, %v1164_v8  ;;  %v2173_v40 = vld [vmem:[%s3685_s5 + $0x270] sm:$0xff]  ;;  %v2172_v41 = vld [vmem:[%s3685_s5 + $0x268] sm:$0xff]  ;;  %v2171_v49 = vld [vmem:[%s3685_s5 + $0x260] sm:$0xff]  ;;  %v1334_v18 = vrot.slane %v3124_v59, 1 }
 0x2e7   :  { %1362 = vmatpush1.msra.mxu1 %v2195_v3  ;;  %1250 = vmatmul.mubr.f32.vlgmr.msra.gmra.mxu0 %v1150_v61  ;;  %v1331_v38 = vsel %vm1325_vm6, %v1329_v44, %v1330_v1  ;;  %v2170_v3 = vld [vmem:[%s3685_s5 + $0x258] sm:$0xff]  ;;  %v2169_v54 = vld [vmem:[%s3685_s5 + $0x250] sm:$0xff]  ;;  %v2168_v6 = vld [vmem:[%s3685_s5 + $0x248] sm:$0xff] }
 0x2e8   :  { %1363 = vmatprep.subr.mxu1 %v2194_v55  ;;  %1115 = vmatmul.mubr.f32.gmra.mxu1 %v3083_v37  ;;  %v952_v21 = vld [vmem:[#allocation2 + $0x50] sm:$0x7]  ;;  %v2167_v55 = vld [vmem:[%s3685_s5 + $0x240] sm:$0xff]  ;;  %v2202_v0 = vld [vmem:[%s3685_s5 + $0x358] sm:$0xff] }
 0x2e9   :  { %2163 = vmatprep.mubr.msk.f32.mxu0 %vm526_vm1, %v1157_v62  ;;  %1364 = vmatpush1.msra.mxu1 %v2193_v4  ;;  %v1166_v35 = vrot.slane %v952_v21, 7  ;;  %v990_v39 = vld [vmem:[#allocation2 + $0x50] sm:$0xf]  ;;  %v1531_v42 = vld [vmem:[%s3682_s2 + $0xd8] sm:$0xff]  ;;  %v1529_v21 = vld [vmem:[%s3682_s2 + $0xc8] sm:$0xff] }
 0x2ea   :  { %2159 = vmatprep.mubr.msk.f32.mxu1 %vm526_vm1, %v3124_v59  ;;  %1365 = vmatprep.subr.mxu1 %v2192_v10  ;;  %v953_v7 = vld [vmem:[#allocation2 + $0x58] sm:$0x7]  ;;  %v1280_v61 = vld [vmem:[#allocation2 + $0x10] sm:$0xfe]  ;;  %v2200_v10 = vld [vmem:[%s3685_s5 + $0x348] sm:$0xff]  ;;  %v1335_v59 = vsel %vm1325_vm6, %v1330_v1, %v1334_v18 }
 0x2eb   :  { %1366 = vmatpush1.msra.mxu1 %v2191_v63  ;;  %1256 = vmatmul.mubr.f32.gmra.mxu0 %v1155_v9  ;;  %v1168_v34 = vrot.slane %v953_v7, 7  ;;  %v991_v16 = vld [vmem:[#allocation2 + $0x58] sm:$0xf]  ;;  %v1167_v47 = vsel %vm1147_vm5, %v1162_v19, %v1166_v35  ;;  %v2201_v4 = vld [vmem:[%s3685_s5 + $0x350] sm:$0xff]  ;;  %v1326_v62 = vrot.slane %v1280_v61, 1  ;;  %v2199_v63 = vld [vmem:[%s3685_s5 + $0x340] sm:$0xff] }
 0x2ec   :  { %1367 = vmatprep.subr.mxu1 %v2190_v22  ;;  %1121 = vmatmul.mubr.f32.gmra.mxu1 %v3086_v58  ;;  %v1327_v22 = vrot.slane %v3083_v37, 1  ;;  %v1332_v9 = vrot.slane %v3086_v58, 1  ;;  %v1533_v19 = vld [vmem:[%s3682_s2 + $0xe8] sm:$0xff]  ;;  %v1522_v44 = vld [vmem:[%s3682_s2 + $0x90] sm:$0xff]  ;;  %v1519_v35 = vld [vmem:[%s3682_s2 + $0x78] sm:$0xff] }
 0x2ed   :  { %2164 = vmatprep.mubr.msk.f32.mxu0 %vm526_vm1, %v1161_v17  ;;  %1368 = vmatpush1.msra.mxu1 %v2189_v14  ;;  %v1169_v26 = vsel %vm1147_vm5, %v1164_v8, %v1168_v34  ;;  %v1338_v14 = vrot.slane %v3146_v2, 1  ;;  %v1336_v17 = vrot.slane %v3089_v33, 1  ;;  %v1526_v34 = vld [vmem:[%s3682_s2 + $0xb0] sm:$0xff]  ;;  %v1525_v1 = vld [vmem:[%s3682_s2 + $0xa8] sm:$0xff]  ;;  %v1536_v61 = vld [vmem:[%s3682_s2 + $0x100] sm:$0xff] }
 0x2ee   :  { %2160 = vmatprep.mubr.msk.f32.mxu1 %vm526_vm1, %v3146_v2  ;;  %1369 = vmatprep.subr.mxu1 %v2188_v28  ;;  %v1328_v11 = vsel %vm1325_vm6, %v1326_v62, %v1327_v22  ;;  %v1283_v28 = vld [vmem:[#allocation2 + $0x58] sm:$0x1f]  ;;  %v1333_v37 = vsel %vm1325_vm6, %v1327_v22, %v1332_v9 }
 0x2ef   :  { %1370 = vmatpush1.msra.mxu1 %v2187_v15  ;;  %1262 = vmatmul.mubr.f32.gmra.mxu0 %v1159_v25  ;;  %v1339_v58 = vsel %vm1325_vm6, %v1334_v18, %v1338_v14  ;;  %v1342_v8 = vrot.slane %v1283_v28, 1  ;;  %v1282_v15 = vld [vmem:[#allocation2 + $0x50] sm:$0x1f]  ;;  %v1337_v2 = vsel %vm1325_vm6, %v1332_v9, %v1336_v17 }
 0x2f0   :  { %1371 = vmatprep.subr.mxu1 %v2186_v29  ;;  %1127 = vmatmul.mubr.f32.gmra.mxu1 %v3089_v33  ;;  %v1340_v29 = vrot.slane %v1282_v15, 1  ;;  %v1535_v33 = vld [vmem:[%s3682_s2 + $0xf8] sm:$0xff]  ;;  %v1534_v25 = vld [vmem:[%s3682_s2 + $0xf0] sm:$0xff] }
 0x2f1   :  { %2165 = vmatprep.mubr.msk.f32.mxu0 %vm526_vm1, %v1165_v23  ;;  %1372 = vmatpush1.msra.mxu1 %v2185_v12  ;;  %v1343_v53 = vsel %vm1325_vm6, %v1338_v14, %v1342_v8  ;;  %v1532_v12 = vld [vmem:[%s3682_s2 + $0xe0] sm:$0xff] }
 0x2f2   :  { %2161 = vmatprep.mubr.msk.f32.mxu1 %vm526_vm1, %v991_v16  ;;  %1373 = vmatprep.subr.mxu1 %v2184_v20  ;;  %v1341_v7 = vsel %vm1325_vm6, %v1336_v17, %v1340_v29  ;;  %v1530_v20 = vld [vmem:[%s3682_s2 + $0xd0] sm:$0xff]  ;;  %v1528_v23 = vld [vmem:[%s3682_s2 + $0xc0] sm:$0xff] }
 0x2f3   :  { %1374 = vmatpush1.msra.mxu1 %v2183_v27  ;;  %1268 = vmatmul.mubr.f32.gmra.mxu0 %v1163_v60  ;;  %v1527_v27 = vld [vmem:[%s3682_s2 + $0xb8] sm:$0xff]  ;;  %v1524_v16 = vld [vmem:[%s3682_s2 + $0xa0] sm:$0xff]  ;;  %v1521_v60 = vld [vmem:[%s3682_s2 + $0x88] sm:$0xff] }
 0x2f4   :  { %1375 = vmatprep.subr.mxu1 %v2182_v31  ;;  %1133 = vmatmul.mubr.f32.gmra.mxu1 %v990_v39  ;;  %v1523_v31 = vld [vmem:[%s3682_s2 + $0x98] sm:$0xff]  ;;  %v1518_v39 = vld [vmem:[%s3682_s2 + $0x70] sm:$0xff]  ;;  %v3383_v17 = vld [vmem:[%s3686_s6] sm:$0x77] }
 0x2f5   :  { %2166 = vmatprep.mubr.msk.f32.mxu0 %vm526_vm1, %v1169_v26  ;;  %1376 = vmatpush1.msra.mxu1 %v2181_v13  ;;  %v1520_v13 = vld [vmem:[%s3682_s2 + $0x80] sm:$0xff]  ;;  %v1473_v15 = vrot.slane %v3383_v17, %v458_v57 }
 0x2f6   :  { %1377 = vmatprep.subr.mxu1 %v2180_v43  ;;  %2203 = vmatprep.mubr.msk.f32.mxu1 %vm526_vm1, %v1331_v38  ;;  %v1517_v43 = vld [vmem:[%s3682_s2 + $0x68] sm:$0xff]  ;;  %v1516_v26 = vld [vmem:[%s3682_s2 + $0x60] sm:$0xff]  ;;  %v1514_v38 = vld [vmem:[%s3682_s2 + $0x50] sm:$0xff] }
 0x2f7   :  { %1378 = vmatpush1.msra.mxu1 %v2179_v45  ;;  %1274 = vmatmul.mubr.f32.gmra.mxu0 %v1167_v47  ;;  %v1515_v45 = vld [vmem:[%s3682_s2 + $0x58] sm:$0xff]  ;;  %v1512_v47 = vld [vmem:[%s3682_s2 + $0x40] sm:$0xff] }
 0x2f8   :  { %1379 = vmatprep.subr.mxu1 %v2178_v46  ;;  %1555 = vmatprep.subr.mxu0 %v1535_v33  ;;  %v1513_v46 = vld [vmem:[%s3682_s2 + $0x48] sm:$0xff] }
 0x2f9   :  { %1380 = vmatpush1.msra.mxu1 %v2177_v51  ;;  %1556 = vmatpush1.msra.mxu0 %v1534_v25  ;;  %v1511_v51 = vld [vmem:[%s3682_s2 + $0x38] sm:$0xff] }
 0x2fa   :  { %1381 = vmatprep.subr.mxu1 %v2176_v24  ;;  %1557 = vmatprep.subr.mxu0 %v1533_v19  ;;  %v1510_v24 = vld [vmem:[%s3682_s2 + $0x30] sm:$0xff] }
 0x2fb   :  { %1382 = vmatpush1.msra.mxu1 %v2175_v36  ;;  %1558 = vmatpush1.msra.mxu0 %v1532_v12  ;;  %v1509_v36 = vld [vmem:[%s3682_s2 + $0x28] sm:$0xff] }
 0x2fc   :  { %1383 = vmatprep.subr.mxu1 %v2174_v48  ;;  %1559 = vmatprep.subr.mxu0 %v1531_v42  ;;  %v1508_v48 = vld [vmem:[%s3682_s2 + $0x20] sm:$0xff] }
 0x2fd   :  { %1384 = vmatpush1.msra.mxu1 %v2173_v40  ;;  %1560 = vmatpush1.msra.mxu0 %v1530_v20  ;;  %v1507_v40 = vld [vmem:[%s3682_s2 + $0x18] sm:$0xff] }
 0x2fe   :  { %1385 = vmatprep.subr.mxu1 %v2172_v41  ;;  %1561 = vmatprep.subr.mxu0 %v1529_v21  ;;  %v1506_v41 = vld [vmem:[%s3682_s2 + $0x10] sm:$0xff] }
 0x2ff   :  { %1386 = vmatpush1.msra.mxu1 %v2171_v49  ;;  %1562 = vmatpush1.msra.mxu0 %v1528_v23  ;;  %v1505_v49 = vld [vmem:[%s3682_s2 + $0x8] sm:$0xff] }
 0x300   :  { %1387 = vmatprep.subr.mxu1 %v2170_v3  ;;  %1563 = vmatprep.subr.mxu0 %v1527_v27  ;;  %v1504_v3 = vld [vmem:[%s3682_s2] sm:$0xff] }
 0x301   :  { %1388 = vmatpush1.msra.mxu1 %v2169_v54  ;;  %1564 = vmatpush1.msra.mxu0 %v1526_v34  ;;  %v1539_v54 = vld [vmem:[%s3682_s2 + $0x118] sm:$0xff] }
 0x302   :  { %1389 = vmatprep.subr.mxu1 %v2168_v6  ;;  %1565 = vmatprep.subr.mxu0 %v1525_v1  ;;  %v1538_v6 = vld [vmem:[%s3682_s2 + $0x110] sm:$0xff] }
 0x303   :  { %1390 = vmatpush1.msra.mxu1 %v2167_v55  ;;  %1566 = vmatpush1.msra.mxu0 %v1524_v16  ;;  %v1537_v55 = vld [vmem:[%s3682_s2 + $0x108] sm:$0xff] }
 0x304   :  { %1419 = vmatprep.subr.mxu1 %v2202_v0  ;;  %1567 = vmatprep.subr.mxu0 %v1523_v31 }
 0x305   :  { %1420 = vmatpush2.msra.mxu1 %v2201_v4  ;;  %1568 = vmatpush1.msra.mxu0 %v1522_v44 }
 0x306   :  { %1421 = vmatprep.subr.mxu1 %v2200_v10  ;;  %1569 = vmatprep.subr.mxu0 %v1521_v60 }
 0x307   :  { %1422 = vmatpush2.msra.mxu1 %v2199_v63  ;;  %1570 = vmatpush1.msra.mxu0 %v1520_v13 }
 0x308   :  { %1424 = vmatmul.mubr.f32.vlgmr.msra.gmra.mxu1 %v1328_v11  ;;  %1723 = vmatprep.subr.mxu1 %v1535_v33 }
 0x309   :  { %2204 = vmatprep.mubr.msk.f32.mxu1 %vm526_vm1, %v1335_v59  ;;  %1724 = vmatpush1.msra.mxu1 %v1534_v25 }
 0x30a   :  { %1725 = vmatprep.subr.mxu1 %v1533_v19  ;;  %1571 = vmatprep.subr.mxu0 %v1519_v35 }
 0x30b   :  { %1726 = vmatpush1.msra.mxu1 %v1532_v12  ;;  %1572 = vmatpush1.msra.mxu0 %v1518_v39  ;;  %v1483_v12 = vrot.slane %v1473_v15, %v2638_v56  ;;  %v3456_v15 = vld [vmem:[%s3684_s1 + $0x38] sm:$0xff] }
 0x30c   :  { %1430 = vmatmul.mubr.f32.gmra.mxu1 %v1333_v37  ;;  %1727 = vmatprep.subr.mxu1 %v1531_v42 }
 0x30d   :  { %2205 = vmatprep.mubr.msk.f32.mxu1 %vm526_vm1, %v1339_v58  ;;  %1728 = vmatpush1.msra.mxu1 %v1530_v20 }
 0x30e   :  { %1729 = vmatprep.subr.mxu1 %v1529_v21  ;;  %1573 = vmatprep.subr.mxu0 %v1517_v43 }
 0x30f   :  { %1730 = vmatpush1.msra.mxu1 %v1528_v23  ;;  %1574 = vmatpush1.msra.mxu0 %v1516_v26 }
 0x310   :  { %1436 = vmatmul.mubr.f32.gmra.mxu1 %v1337_v2  ;;  %1731 = vmatprep.subr.mxu1 %v1527_v27 }
 0x311   :  { %2206 = vmatprep.mubr.msk.f32.mxu1 %vm526_vm1, %v1343_v53  ;;  %1732 = vmatpush1.msra.mxu1 %v1526_v34 }
 0x312   :  { %1733 = vmatprep.subr.mxu1 %v1525_v1  ;;  %1575 = vmatprep.subr.mxu0 %v1515_v45 }
 0x313   :  { %1734 = vmatpush1.msra.mxu1 %v1524_v16  ;;  %1576 = vmatpush1.msra.mxu0 %v1514_v38 }
 0x314   :  { %1442 = vmatmul.mubr.f32.gmra.mxu1 %v1341_v7  ;;  %1735 = vmatprep.subr.mxu1 %v1523_v31 }
 0x315   :  { %2207 = vmatprep.mubr.msk.f32.mxu1 %vm526_vm1, %v1342_v8  ;;  %1736 = vmatpush1.msra.mxu1 %v1522_v44  ;;  %v1469_v8 = vrot.slane %v3383_v17, %v2638_v56 }
 0x316   :  { %1737 = vmatprep.subr.mxu1 %v1521_v60  ;;  %1577 = vmatprep.subr.mxu0 %v1513_v46 }
 0x317   :  { %1738 = vmatpush1.msra.mxu1 %v1520_v13  ;;  %1578 = vmatpush1.msra.mxu0 %v1512_v47  ;;  %v1479_v33 = vrot.slane %v1469_v8, %v2638_v56  ;;  %v3399_v13 = vld [vmem:[%s3684_s1 + $0x8] sm:$0xff] }
 0x318   :  { %1448 = vmatmul.mubr.f32.gmra.mxu1 %v1340_v29  ;;  %1739 = vmatprep.subr.mxu1 %v1519_v35 }
 0x319   :  { %1740 = vmatpush1.msra.mxu1 %v1518_v39  ;;  %1579 = vmatprep.subr.mxu0 %v1511_v51  ;;  %v3406_v39 = vld [vmem:[%s3684_s1] sm:$0xff] }
 0x31a   :  { %1741 = vmatprep.subr.mxu1 %v1517_v43  ;;  %1580 = vmatpush1.msra.mxu0 %v1510_v24 }
 0x31b   :  { %1742 = vmatpush1.msra.mxu1 %v1516_v26  ;;  %1581 = vmatprep.subr.mxu0 %v1509_v36 }
 0x31c   :  { %1743 = vmatprep.subr.mxu1 %v1515_v45  ;;  %1582 = vmatpush1.msra.mxu0 %v1508_v48 }
 0x31d   :  { %1744 = vmatpush1.msra.mxu1 %v1514_v38  ;;  %1583 = vmatprep.subr.mxu0 %v1507_v40 }
 0x31e   :  { %1745 = vmatprep.subr.mxu1 %v1513_v46  ;;  %1584 = vmatpush1.msra.mxu0 %v1506_v41 }
 0x31f   :  { %1746 = vmatpush1.msra.mxu1 %v1512_v47  ;;  %1585 = vmatprep.subr.mxu0 %v1505_v49 }
 0x320   :  { %1747 = vmatprep.subr.mxu1 %v1511_v51  ;;  %1586 = vmatpush1.msra.mxu0 %v1504_v3 }
 0x321   :  { %1748 = vmatpush1.msra.mxu1 %v1510_v24  ;;  %1615 = vmatprep.subr.mxu0 %v1539_v54 }
 0x322   :  { %1749 = vmatprep.subr.mxu1 %v1509_v36  ;;  %1616 = vmatpush2.msra.mxu0 %v1538_v6 }
 0x323   :  { %1750 = vmatpush1.msra.mxu1 %v1508_v48  ;;  %1617 = vmatprep.subr.mxu0 %v1537_v55  ;;  %v3418_v48 = vld [vmem:[%s3684_s1 + $0x18] sm:$0xff] }
 0x324   :  { %1751 = vmatprep.subr.mxu1 %v1507_v40  ;;  %1618 = vmatpush2.msra.mxu0 %v1536_v61 }
 0x325   :  { %1752 = vmatpush1.msra.mxu1 %v1506_v41 }
 0x326   :  { %1753 = vmatprep.subr.mxu1 %v1505_v49 }
 0x327   :  { %1754 = vmatpush1.msra.mxu1 %v1504_v3 }
 0x328   :  { %1783 = vmatprep.subr.mxu1 %v1539_v54  ;;  %v3427_v54 = vld [vmem:[%s3684_s1 + $0x10] sm:$0xff] }
 0x329   :  { %1784 = vmatpush2.msra.mxu1 %v1538_v6 }
 0x32a   :  { %1785 = vmatprep.subr.mxu1 %v1537_v55 }
 0x32b   :  { %1786 = vmatpush2.msra.mxu1 %v1536_v61 }
 0x3a4   :  { %v1110_v0 = vpop.f32.mrf.mxu1 }
 0x3a6   :  { %v1112_v4 = vpop.f32.mrf.mxu1 }
 0x3a7   :  { %v1251_v18 = vpop.f32.mrf.mxu0 }
 0x3a8   :  { %v1116_v10 = vpop.f32.mrf.mxu1  ;;  %v1252_v53 = vadd.f32 %v1251_v18, %v1110_v0  ;;  %v3437_v18 = vld [vmem:[%s3684_s1 + $0x28] sm:$0xff] }
 0x3a9   :  { %v1253_v22 = vpop.f32.mrf.mxu0 }
 0x3aa   :  { %v1118_v62 = vpop.f32.mrf.mxu1  ;;  %v1254_v25 = vadd.f32 %v1253_v22, %v1112_v4 }
 0x3ab   :  { %v1257_v11 = vpop.f32.mrf.mxu0 }
 0x3ac   :  { %v1122_v63 = vpop.f32.mrf.mxu1  ;;  %v1258_v21 = vadd.f32 %v1257_v11, %v1116_v10 }
 0x3ad   :  { %v1259_v59 = vpop.f32.mrf.mxu0 }
 0x3ae   :  { %v1124_v9 = vpop.f32.mrf.mxu1  ;;  %v1260_v1 = vadd.f32 %v1259_v59, %v1118_v62 }
 0x3af   :  { %v1263_v37 = vpop.f32.mrf.mxu0 }
 0x3b0   :  { %v1128_v14 = vpop.f32.mrf.mxu1  ;;  %v1264_v60 = vadd.f32 %v1263_v37, %v1122_v63 }
 0x3b1   :  { %v1265_v2 = vpop.f32.mrf.mxu0 }
 0x3b2   :  { %v1130_v28 = vpop.f32.mrf.mxu1  ;;  %v1266_v38 = vadd.f32 %v1265_v2, %v1124_v9 }
 0x3b3   :  { %v1269_v42 = vpop.f32.mrf.mxu0 }
 0x3b4   :  { %v1134_v58 = vpop.f32.mrf.mxu1  ;;  %v1270_v36 = vadd.f32 %v1269_v42, %v1128_v14  ;;  %v3446_v14 = vld [vmem:[%s3684_s1 + $0x20] sm:$0xff]  ;;  %v3475_v42 = vld [vmem:[%s3684_s1 + $0x48] sm:$0xf] }
 0x3b5   :  { %v1271_v31 = vpop.f32.mrf.mxu0 }
 0x3b6   :  { %v1136_v29 = vpop.f32.mrf.mxu1  ;;  %v1272_v55 = vadd.f32 %v1271_v31, %v1130_v28 }
 0x3b7   :  { %v1275_v51 = vpop.f32.mrf.mxu0 }
 0x3b8   :  { %v1276_v62 = vadd.f32 %v1275_v51, %v1134_v58 }
 0x3b9   :  { %v1277_v4 = vpop.f32.mrf.mxu0 }
 0x3ba   :  { %v1278_v28 = vadd.f32 %v1277_v4, %v1136_v29  ;;  %v3465_v29 = vld [vmem:[%s3684_s1 + $0x30] sm:$0xff] }
 0x3c8   :  { %v1425_v7 = vpop.f32.mrf.mxu1 }
 0x3c9   :  { %v1454_v19 = vadd.f32 %v1425_v7, %v1252_v53 }
 0x3ca   :  { %v1427_v20 = vpop.f32.mrf.mxu1 }
 0x3cb   :  { %v1455_v23 = vadd.f32 %v1427_v20, %v1254_v25  ;;  %v3392_v27 = vadd.f32 %v1479_v33, %v1454_v19  ;;  %v3482_v20 = vld [vmem:[%s3684_s1 + $0x40] sm:$0xf]  ;;  %s2240_s1 = smov 120  }
 0x3cc   :  { %v1431_v34 = vpop.f32.mrf.mxu1 }
 0x3cd   :  { %v3394_v16 = vadd.f32 %v1483_v12, %v1455_v23  ;;  %v1456_v57 = vadd.f32 %v1431_v34, %v1258_v21  ;;  %v1494_v43 = vmul.f32 %v3406_v39, %v3392_v27 }
 0x3ce   :  { %v1433_v44 = vpop.f32.mrf.mxu1 }
 0x3cf   :  { %v1495_v56 = vmul.f32 %v3399_v13, %v3394_v16  ;;  %v1457_v35 = vadd.f32 %v1433_v44, %v1260_v1  ;;  %v3410_v26 = vadd.f32 %v1479_v33, %v1456_v57 }
 0x3d0   :  { %v1437_v45 = vpop.f32.mrf.mxu1 }
 0x3d1   :  { %v3412_v46 = vadd.f32 %v1483_v12, %v1457_v35  ;;  %v1458_v47 = vadd.f32 %v1437_v45, %v1264_v60  ;;  %2208 = vmatprep.mubr.msk.f32.mxu0 %vm526_vm1, %v1495_v56  ;;  %v1496_v6 = vmul.f32 %v3427_v54, %v3410_v26 }
 0x3d2   :  { %v1439_v24 = vpop.f32.mrf.mxu1  ;;  %1620 = vmatmul.mubr.f32.vlgmr.msra.gmra.mxu0 %v1494_v43 }
 0x3d3   :  { %v1497_v40 = vmul.f32 %v3418_v48, %v3412_v46  ;;  %v1459_v41 = vadd.f32 %v1439_v24, %v1266_v38  ;;  %v3422_v49 = vadd.f32 %v1479_v33, %v1458_v47 }
 0x3d4   :  { %v1443_v3 = vpop.f32.mrf.mxu1 }
 0x3d5   :  { %v3431_v61 = vadd.f32 %v1483_v12, %v1459_v41  ;;  %v1460_v0 = vadd.f32 %v1443_v3, %v1270_v36  ;;  %2209 = vmatprep.mubr.msk.f32.mxu0 %vm526_vm1, %v1497_v40  ;;  %v1498_v59 = vmul.f32 %v3446_v14, %v3422_v49 }
 0x3d6   :  { %v1445_v10 = vpop.f32.mrf.mxu1  ;;  %1626 = vmatmul.mubr.f32.gmra.mxu0 %v1496_v6 }
 0x3d7   :  { %v1499_v63 = vmul.f32 %v3437_v18, %v3431_v61  ;;  %v1461_v22 = vadd.f32 %v1445_v10, %v1272_v55  ;;  %v3441_v9 = vadd.f32 %v1479_v33, %v1460_v0 }
 0x3d8   :  { %v1449_v11 = vpop.f32.mrf.mxu1 }
 0x3d9   :  { %v3450_v37 = vadd.f32 %v1483_v12, %v1461_v22  ;;  %v1462_v58 = vadd.f32 %v1449_v11, %v1276_v62  ;;  %2210 = vmatprep.mubr.msk.f32.mxu0 %vm526_vm1, %v1499_v63  ;;  %v1500_v25 = vmul.f32 %v3465_v29, %v3441_v9 }
 0x3da   :  { %v1451_v8 = vpop.f32.mrf.mxu1  ;;  %1632 = vmatmul.mubr.f32.gmra.mxu0 %v1498_v59 }
 0x3db   :  { %v1501_v2 = vmul.f32 %v3456_v15, %v3450_v37  ;;  %v1463_v53 = vadd.f32 %v1451_v8, %v1278_v28  ;;  %v3460_v7 = vadd.f32 %v1479_v33, %v1462_v58 }
 0x3dd   :  { %v3469_v19 = vadd.f32 %v1483_v12, %v1463_v53  ;;  %2211 = vmatprep.mubr.msk.f32.mxu0 %vm526_vm1, %v1501_v2  ;;  %v1502_v12 = vmul.f32 %v3482_v20, %v3460_v7 }
 0x3de   :  { %1638 = vmatmul.mubr.f32.gmra.mxu0 %v1500_v25 }
 0x3df   :  { %v1503_v33 = vmul.f32 %v3475_v42, %v3469_v19 }
 0x3e1   :  { %2212 = vmatprep.mubr.msk.f32.mxu0 %vm526_vm1, %v1503_v33 }
 0x3e2   :  { %1644 = vmatmul.mubr.f32.gmra.mxu0 %v1502_v12 }
 0x492   :  { %v1621_v21 = vpop.f32.mrf.mxu0 }
 0x494   :  { %v1623_v23 = vpop.f32.mrf.mxu0 }
 0x495   :  { %v1661_v35 = vsel %vm526_vm1, %v1623_v23, 0.0 }
 0x496   :  { %v1627_v34 = vpop.f32.mrf.mxu0 }
 0x497   :  { %v1650_v60 = vadd.f32 %v1627_v34, %v1621_v21 }
 0x498   :  { %v1629_v1 = vpop.f32.mrf.mxu0 }
 0x499   :  { %v1662_v44 = vsel %vm526_vm1, %v1629_v1, 0.0 }
 0x49a   :  { %v1633_v57 = vpop.f32.mrf.mxu0  ;;  %v1663_v45 = vadd.f32 %v1662_v44, %v1661_v35 }
 0x49b   :  { %v1651_v38 = vadd.f32 %v1650_v60, %v1633_v57 }
 0x49c   :  { %v1635_v31 = vpop.f32.mrf.mxu0 }
 0x49d   :  { %v1664_v43 = vsel %vm526_vm1, %v1635_v31, 0.0 }
 0x49e   :  { %v1639_v56 = vpop.f32.mrf.mxu0  ;;  %v1665_v24 = vadd.f32 %v1664_v43, %v1663_v45 }
 0x49f   :  { %v1652_v36 = vadd.f32 %v1651_v38, %v1639_v56 }
 0x4a0   :  { %v1641_v47 = vpop.f32.mrf.mxu0 }
 0x4a1   :  { %v1666_v51 = vsel %vm526_vm1, %v1641_v47, 0.0 }
 0x4a2   :  { %v1645_v40 = vpop.f32.mrf.mxu0  ;;  %v1667_v3 = vadd.f32 %v1666_v51, %v1665_v24 }
 0x4a3   :  { %v1653_v41 = vsel %vm640_vm3, %v1645_v40, 0.0 }
 0x4a4   :  { %v1654_v6 = vadd.f32 %v1653_v41, %v1652_v36  ;;  %v1647_v55 = vpop.f32.mrf.mxu0 }
 0x4a5   :  { %v1668_v0 = vsel %vm656_vm2, %v1647_v55, 0.0 }
 0x4a6   :  { %v1655_v4 = vrot.slane %v1654_v6, 4  ;;  %v1669_v10 = vadd.f32 %v1668_v0, %v1667_v3 }
 0x4a8   :  { %v1656_v62 = vadd.f32 %v1655_v4, %v1654_v6  ;;  %v1670_v63 = vrot.slane %v1669_v10, 4 }
 0x4aa   :  { %v1657_v22 = vrot.slane %v1656_v62, 2  ;;  %v1671_v11 = vadd.f32 %v1670_v63, %v1669_v10 }
 0x4ac   :  { %v1658_v59 = vadd.f32 %v1657_v22, %v1656_v62  ;;  %v1672_v28 = vrot.slane %v1671_v11, 2 }
 0x4ae   :  { %v1659_v58 = vrot.slane %v1658_v59, 1  ;;  %v1673_v8 = vadd.f32 %v1672_v28, %v1671_v11 }
 0x4b0   :  { %v1660_v2 = vadd.f32 %v1659_v58, %v1658_v59  ;;  %v1674_v53 = vrot.slane %v1673_v8, 1 }
 0x4b2   :  { %v1676_v25 = vmul.f32 0.001953125, %v1660_v2  ;;  %v1675_v33 = vadd.f32 %v1674_v53, %v1673_v8 }
 0x4b4   :  { %v1677_v12 = vmul.f32 0.001953125, %v1675_v33  ;;  %v3494_v21 = vsub.f32 %v3392_v27, %v1676_v25  ;;  %v3505_v57 = vsub.f32 %v3410_v26, %v1676_v25  ;;  %v3517_v56 = vsub.f32 %v3422_v49, %v1676_v25 }
 0x4b5   :  { %v3540_v45 = vsub.f32 %v3460_v7, %v1676_v25 }
 0x4b6   :  { %v3497_v23 = vsub.f32 %v3394_v16, %v1677_v12  ;;  %v3500_v34 = vsub.f32 %v3412_v46, %v1677_v12  ;;  %v1688_v1 = vmul.f32 %v3406_v39, %v3494_v21  ;;  %v3512_v27 = vsub.f32 %v3431_v61, %v1677_v12 }
 0x4b7   :  { %v1690_v46 = vmul.f32 %v3427_v54, %v3505_v57  ;;  %v3523_v26 = vsub.f32 %v3450_v37, %v1677_v12  ;;  %v1692_v61 = vmul.f32 %v3446_v14, %v3517_v56  ;;  %v3529_v54 = vsub.f32 %v3441_v9, %v1676_v25 }
 0x4b8   :  { %v1689_v31 = vmul.f32 %v3399_v13, %v3497_v23  ;;  %v1691_v44 = vmul.f32 %v3418_v48, %v3500_v34  ;;  %v1698_v60 = vmul.f32 %v1688_v1, %v1688_v1  ;;  %v1693_v13 = vmul.f32 %v3437_v18, %v3512_v27 }
 0x4b9   :  { %v1700_v48 = vmul.f32 %v1690_v46, %v1690_v46  ;;  %v1695_v35 = vmul.f32 %v3456_v15, %v3523_v26  ;;  %v3534_v43 = vsub.f32 %v3469_v19, %v1677_v12  ;;  %v1702_v18 = vmul.f32 %v1692_v61, %v1692_v61 }
 0x4ba   :  { %v1699_v16 = vmul.f32 %v1689_v31, %v1689_v31  ;;  %v1701_v39 = vmul.f32 %v1691_v44, %v1691_v44  ;;  %v1703_v49 = vmul.f32 %v1693_v13, %v1693_v13  ;;  %v1694_v37 = vmul.f32 %v3465_v29, %v3529_v54 }
 0x4bb   :  { %v1705_v14 = vmul.f32 %v1695_v35, %v1695_v35  ;;  %v1697_v9 = vmul.f32 %v3475_v42, %v3534_v43  ;;  %v1696_v19 = vmul.f32 %v3482_v20, %v3540_v45 }
 0x4bc   :  { %2213 = vmatprep.mubr.msk.f32.mxu1 %vm526_vm1, %v1699_v16  ;;  %v1704_v15 = vmul.f32 %v1694_v37, %v1694_v37  ;;  %v1891_v37 = vrot.slane %v3383_v17, %v3053_v32 }
 0x4bd   :  { %1788 = vmatmul.mubr.f32.vlgmr.msra.gmra.mxu1 %v1698_v60  ;;  %v1707_v38 = vmul.f32 %v1697_v9, %v1697_v9  ;;  %v1706_v47 = vmul.f32 %v1696_v19, %v1696_v19  ;;  %v1895_v9 = vrot.slane %v3383_v17, %v883_v5 }
 0x4be   :  { %2214 = vmatprep.mubr.msk.f32.mxu1 %vm526_vm1, %v1701_v39 }
 0x4bf   :  { %v1905_v52 = vrot.slane %v1895_v9, %v3053_v32 }
 0x4c1   :  { %1794 = vmatmul.mubr.f32.gmra.mxu1 %v1700_v48 }
 0x4c2   :  { %2215 = vmatprep.mubr.msk.f32.mxu1 %vm526_vm1, %v1703_v49 }
 0x4c5   :  { %1800 = vmatmul.mubr.f32.gmra.mxu1 %v1702_v18  ;;  %v1863_v18 = vrot.slane %v3383_v17, %v3049_v30 }
 0x4c6   :  { %2216 = vmatprep.mubr.msk.f32.mxu1 %vm526_vm1, %v1705_v14  ;;  %v1867_v14 = vrot.slane %v3383_v17, %v855_v50 }
 0x4c9   :  { %1806 = vmatmul.mubr.f32.gmra.mxu1 %v1704_v15  ;;  %v1873_v15 = vrot.slane %v1863_v18, %v3049_v30 }
 0x4ca   :  { %2217 = vmatprep.mubr.msk.f32.mxu1 %vm526_vm1, %v1707_v38  ;;  %v1901_v38 = vrot.slane %v1891_v37, %v3053_v32 }
 0x4cd   :  { %1812 = vmatmul.mubr.f32.gmra.mxu1 %v1706_v47  ;;  %v1877_v47 = vrot.slane %v1867_v14, %v3049_v30 }
 0x57d   :  { %v1789_v29 = vpop.f32.mrf.mxu1 }
 0x57f   :  { %v1791_v7 = vpop.f32.mrf.mxu1 }
 0x580   :  { %v1829_v6 = vsel %vm526_vm1, %v1791_v7, 0.0 }
 0x581   :  { %v1795_v51 = vpop.f32.mrf.mxu1 }
 0x582   :  { %v1818_v41 = vadd.f32 %v1795_v51, %v1789_v29 }
 0x583   :  { %v1797_v24 = vpop.f32.mrf.mxu1 }
 0x584   :  { %v1830_v42 = vsel %vm526_vm1, %v1797_v24, 0.0 }
 0x585   :  { %v1801_v36 = vpop.f32.mrf.mxu1  ;;  %v1831_v55 = vadd.f32 %v1830_v42, %v1829_v6 }
 0x586   :  { %v1819_v0 = vadd.f32 %v1818_v41, %v1801_v36 }
 0x587   :  { %v1803_v40 = vpop.f32.mrf.mxu1 }
 0x588   :  { %v1832_v20 = vsel %vm526_vm1, %v1803_v40, 0.0 }
 0x589   :  { %v1807_v3 = vpop.f32.mrf.mxu1  ;;  %v1833_v62 = vadd.f32 %v1832_v20, %v1831_v55 }
 0x58a   :  { %v1820_v63 = vadd.f32 %v1819_v0, %v1807_v3 }
 0x58b   :  { %v1809_v4 = vpop.f32.mrf.mxu1 }
 0x58c   :  { %v1834_v10 = vsel %vm526_vm1, %v1809_v4, 0.0 }
 0x58d   :  { %v1813_v22 = vpop.f32.mrf.mxu1  ;;  %v1835_v59 = vadd.f32 %v1834_v10, %v1833_v62 }
 0x58e   :  { %v1821_v11 = vsel %vm640_vm3, %v1813_v22, 0.0 }
 0x58f   :  { %v1822_v28 = vadd.f32 %v1821_v11, %v1820_v63  ;;  %v1815_v58 = vpop.f32.mrf.mxu1 }
 0x590   :  { %v1836_v8 = vsel %vm656_vm2, %v1815_v58, 0.0 }
 0x591   :  { %v1823_v2 = vrot.slane %v1822_v28, 4  ;;  %v1837_v53 = vadd.f32 %v1836_v8, %v1835_v59 }
 0x593   :  { %v1824_v25 = vadd.f32 %v1823_v2, %v1822_v28  ;;  %v1838_v33 = vrot.slane %v1837_v53, 4 }
 0x595   :  { %v1825_v12 = vrot.slane %v1824_v25, 2  ;;  %v1839_v1 = vadd.f32 %v1838_v33, %v1837_v53 }
 0x597   :  { %v1826_v31 = vadd.f32 %v1825_v12, %v1824_v25  ;;  %v1840_v44 = vrot.slane %v1839_v1, 2 }
 0x599   :  { %v1827_v16 = vrot.slane %v1826_v31, 1  ;;  %v1841_v60 = vadd.f32 %v1840_v44, %v1839_v1 }
 0x59b   :  { %v1828_v46 = vadd.f32 %v1827_v16, %v1826_v31  ;;  %v1842_v39 = vrot.slane %v1841_v60, 1 }
 0x59d   :  { %v1844_v13 = vmul.f32 0.001953125, %v1828_v46  ;;  %v1843_v48 = vadd.f32 %v1842_v39, %v1841_v60 }
 0x59f   :  { %v1846_v61 = vadd.f32 1e-05, %v1844_v13  ;;  %v1845_v49 = vmul.f32 0.001953125, %v1843_v48 }
 0x5a1   :  { %2224 = vrsqrt.f32 %v1846_v61  ;;  %v1847_v35 = vadd.f32 1e-05, %v1845_v49 }
 0x5a3   :  { %2226 = vrsqrt.f32 %v1847_v35 }
 0x5ae   :  { %v2225_v19 = vpop.eup %2224 }
 0x5af   :  { %v1852_v29 = vmul.f32 %v2225_v19, %v3505_v57  ;;  %v1850_v7 = vmul.f32 %v2225_v19, %v3494_v21  ;;  %v1854_v51 = vmul.f32 %v2225_v19, %v3517_v56  ;;  %v1856_v24 = vmul.f32 %v2225_v19, %v3529_v54 }
 0x5b0   :  { %v2227_v50 = vpop.eup %2226  ;;  %v1858_v5 = vmul.f32 %v2225_v19, %v3540_v45 }
 0x5b1   :  { %v1880_v17 = vmul.f32 %v1873_v15, %v1852_v29  ;;  %v1878_v36 = vmul.f32 %v1873_v15, %v1850_v7  ;;  %v1882_v40 = vmul.f32 %v1873_v15, %v1854_v51  ;;  %v1853_v42 = vmul.f32 %v2227_v50, %v3500_v34 }
 0x5b2   :  { %v1884_v41 = vmul.f32 %v1873_v15, %v1856_v24  ;;  %v1855_v30 = vmul.f32 %v2227_v50, %v3512_v27  ;;  %v1857_v57 = vmul.f32 %v2227_v50, %v3523_v26  ;;  %v1851_v21 = vmul.f32 %v2227_v50, %v3497_v23 }
 0x5b3   :  { %v1908_v56 = vadd.f32 %v1901_v38, %v1880_v17  ;;  %v1906_v3 = vadd.f32 %v1901_v38, %v1878_v36  ;;  %v1910_v54 = vadd.f32 %v1901_v38, %v1882_v40  ;;  %v1881_v6 = vmul.f32 %v1877_v47, %v1853_v42 }
 0x5b4   :  { %v1912_v20 = vadd.f32 %v1901_v38, %v1884_v41  ;;  %v1883_v32 = vmul.f32 %v1877_v47, %v1855_v30  ;;  %v1885_v55 = vmul.f32 %v1877_v47, %v1857_v57  ;;  %v1879_v45 = vmul.f32 %v1877_v47, %v1851_v21 }
 0x5b5   :  { %v1918_v0 = vmax.f32 %v1908_v56, 0.0  ;;  %v3577_v4 = vmax.f32 %v1906_v3, 0.0  ;;  %v1920_v10 = vmax.f32 %v1910_v54, 0.0  ;;  %v1909_v34 = vadd.f32 %v1905_v52, %v1881_v6 }
 0x5b6   :  { %v3579_v62 = vmax.f32 %v1912_v20, 0.0  ;;  %v1911_v27 = vadd.f32 %v1905_v52, %v1883_v32  ;;  %v1913_v63 = vadd.f32 %v1905_v52, %v1885_v55  ;;  %v1907_v26 = vadd.f32 %v1905_v52, %v1879_v45 }
 0x5b7   :  { %1950 = vrot.lane.b32.xlu1 %v1918_v0, %s2240_s1  ;;  %1928 = vst [vmem:[%s3687_s7 + $0x10] sm:$0xff] %v1918_v0  ;;  %1946 = vrot.lane.b32.xlu0 %v3577_v4, %s2240_s1  ;;  %1926 = vst [vmem:[%s3687_s7] sm:$0xff] %v3577_v4  ;;  %v1919_v23 = vmax.f32 %v1909_v34, 0.0  ;;  %v1859_v22 = vmul.f32 %v2227_v50, %v3534_v43  ;;  %v1886_v11 = vmul.f32 %v1873_v15, %v1858_v5 }
 0x5b8   :  { %1930 = vst [vmem:[%s3687_s7 + $0x20] sm:$0xff] %v1920_v10  ;;  %1932 = vst [vmem:[%s3687_s7 + $0x30] sm:$0xff] %v3579_v62  ;;  %v1921_v59 = vmax.f32 %v1911_v27, 0.0  ;;  %v1923_v28 = vmax.f32 %v1913_v63, 0.0  ;;  %v1917_v58 = vmax.f32 %v1907_v26, 0.0 }
 0x5b9   :  { %1929 = vst.msk [vmem:[%s3687_s7 + $0x18] sm:$0xff] %vm526_vm1, %v1919_v23  ;;  %v1887_v8 = vmul.f32 %v1877_v47, %v1859_v22  ;;  %v1914_v2 = vadd.f32 %v1901_v38, %v1886_v11 }
 0x5ba   :  { %1931 = vst.msk [vmem:[%s3687_s7 + $0x28] sm:$0xff] %vm526_vm1, %v1921_v59  ;;  %1933 = vst.msk [vmem:[%s3687_s7 + $0x38] sm:$0xff] %vm526_vm1, %v1923_v28 }
 0x5bb   :  { %1927 = vst.msk [vmem:[%s3687_s7 + $0x8] sm:$0xff] %vm526_vm1, %v1917_v58  ;;  %1954 = vrot.lane.b32.xlu0 %v1920_v10, %s2240_s1  ;;  %1952 = vrot.lane.b32.xlu1 %v1919_v23, %s2240_s1  ;;  %v1915_v43 = vadd.f32 %v1905_v52, %v1887_v8  ;;  %v1924_v53 = vmax.f32 %v1914_v2, 0.0 }
 0x5bd   :  { %v1925_v25 = vmax.f32 %v1915_v43, 0.0  ;;  %1934 = vst [vmem:[%s3687_s7 + $0x40] sm:$0xf] %v1924_v53 }
 0x5bf   :  { %1958 = vrot.lane.b32.xlu0 %v3579_v62, %s2240_s1  ;;  %1956 = vrot.lane.b32.xlu1 %v1921_v59, %s2240_s1  ;;  %1935 = vst.msk [vmem:[%s3687_s7 + $0x48] sm:$0xf] %vm656_vm2, %v1925_v25 }
 0x5c3   :  { %1960 = vrot.lane.b32.xlu1 %v1923_v28, %s2240_s1  ;;  %1948 = vrot.lane.b32.xlu0 %v1917_v58, %s2240_s1 }
 0x5c7   :  { %1964 = vrot.lane.b32.xlu1 %v1925_v25, %s2240_s1  ;;  %1962 = vrot.lane.b32.xlu0 %v1924_v53, %s2240_s1 }
 0x629   :  { %v1951_v33 = vpop.permute.xlu1 %1950  ;;  %v1947_v12 = vpop.permute.xlu0 %1946 }
 0x62d   :  { %v1955_v1 = vpop.permute.xlu0 %1954  ;;  %v1953_v31 = vpop.permute.xlu1 %1952 }
 0x62e   :  { %v1968_v44 = vsel %vm1966_vm7, %v1951_v33, %v1953_v31  ;;  %v1985_v16 = vmax.f32 %v1919_v23, %v1953_v31 }
 0x62f   :  { %v1984_v60 = vmax.f32 %v1918_v0, %v1968_v44 }
 0x630   :  { %v2006_v49 = vrot.slane %v1985_v16, 1 }
 0x631   :  { %v1959_v46 = vpop.permute.xlu0 %1958  ;;  %v1957_v39 = vpop.permute.xlu1 %1956  ;;  %v2003_v18 = vrot.slane %v1984_v60, 1 }
 0x632   :  { %v1969_v13 = vsel %vm1966_vm7, %v1955_v1, %v1957_v39  ;;  %v1987_v48 = vmax.f32 %v1921_v59, %v1957_v39 }
 0x633   :  { %v1986_v61 = vmax.f32 %v1920_v10, %v1969_v13 }
 0x634   :  { %v2010_v35 = vrot.slane %v1987_v48, 1 }
 0x635   :  { %v2008_v37 = vrot.slane %v1986_v61, 1  ;;  %v1961_v14 = vpop.permute.xlu1 %1960  ;;  %v1949_v9 = vpop.permute.xlu0 %1948 }
 0x636   :  { %v2011_v15 = vsel %vm1325_vm6, %v2006_v49, %v2010_v35  ;;  %v1970_v19 = vsel %vm1966_vm7, %v1959_v46, %v1961_v14  ;;  %v1989_v38 = vmax.f32 %v1923_v28, %v1961_v14  ;;  %v1967_v47 = vsel %vm1966_vm7, %v1947_v12, %v1949_v9 }
 0x637   :  { %v2009_v29 = vsel %vm1325_vm6, %v2003_v18, %v2008_v37  ;;  %v2033_v7 = vmax.f32 %v1985_v16, %v2011_v15  ;;  %v1988_v51 = vmax.f32 %v3579_v62, %v1970_v19  ;;  %v1982_v24 = vmax.f32 %v3577_v4, %v1967_v47 }
 0x638   :  { %v2032_v50 = vmax.f32 %v1984_v60, %v2009_v29  ;;  %v2014_v52 = vrot.slane %v1989_v38, 1  ;;  %v1983_v5 = vmax.f32 %v1917_v58, %v1949_v9 }
 0x639   :  { %v2012_v17 = vrot.slane %v1988_v51, 1  ;;  %2044 = vst.msk [vmem:[%s3688_s8 + $0x18] sm:$0xff] %vm2041_vm8, %v2033_v7  ;;  %v2002_v36 = vrot.slane %v1982_v24, 1  ;;  %v1965_v40 = vpop.permute.xlu1 %1964  ;;  %v1963_v42 = vpop.permute.xlu0 %1962 }
 0x63a   :  { %2043 = vst [vmem:[%s3688_s8 + $0x10] sm:$0xff] %v2032_v50  ;;  %v2015_v41 = vsel %vm1325_vm6, %v2010_v35, %v2014_v52  ;;  %v2005_v30 = vrot.slane %v1983_v5, 1  ;;  %v1991_v57 = vmax.f32 %v1925_v25, %v1965_v40  ;;  %v1971_v21 = vsel %vm1966_vm7, %v1963_v42, %v1965_v40 }
 0x63b   :  { %v2013_v56 = vsel %vm1325_vm6, %v2008_v37, %v2012_v17  ;;  %v2035_v3 = vmax.f32 %v1987_v48, %v2015_v41  ;;  %v2004_v54 = vsel %vm1325_vm6, %v2002_v36, %v2003_v18  ;;  %v1990_v6 = vmax.f32 %v1924_v53, %v1971_v21 }
 0x63c   :  { %v2034_v20 = vmax.f32 %v1986_v61, %v2013_v56  ;;  %v2007_v32 = vsel %vm1325_vm6, %v2005_v30, %v2006_v49  ;;  %v2030_v55 = vmax.f32 %v1982_v24, %v2004_v54  ;;  %v2018_v45 = vrot.slane %v1991_v57, 1 }
 0x63d   :  { %2046 = vst.msk [vmem:[%s3688_s8 + $0x28] sm:$0xff] %vm2041_vm8, %v2035_v3  ;;  %v2031_v0 = vmax.f32 %v1983_v5, %v2007_v32  ;;  %v2016_v4 = vrot.slane %v1990_v6, 1 }
 0x63e   :  { %2045 = vst [vmem:[%s3688_s8 + $0x20] sm:$0xff] %v2034_v20  ;;  %2040 = vst [vmem:[%s3688_s8] sm:$0xff] %v2030_v55  ;;  %v2019_v10 = vsel %vm1325_vm6, %v2014_v52, %v2018_v45  ;;  %v2039_v34 = vmax.f32 %v1991_v57, %v2018_v45 }
 0x63f   :  { %2042 = vst.msk [vmem:[%s3688_s8 + $0x8] sm:$0xff] %vm2041_vm8, %v2031_v0  ;;  %v2037_v62 = vmax.f32 %v1989_v38, %v2019_v10  ;;  %v2017_v27 = vsel %vm1325_vm6, %v2012_v17, %v2016_v4  ;;  %v2038_v63 = vmax.f32 %v1990_v6, %v2016_v4 }
 0x640   :  { %2051 = vst.msk [vmem:[%s3688_s8 + $0x48] sm:$0x7] %vm2050_vm9, %v2039_v34  ;;  %v2036_v26 = vmax.f32 %v1988_v51, %v2017_v27 }
 0x641   :  { %2048 = vst.msk [vmem:[%s3688_s8 + $0x38] sm:$0xff] %vm2041_vm8, %v2037_v62  ;;  %2049 = vst [vmem:[%s3688_s8 + $0x40] sm:$0x7] %v2038_v63 }
 0x642   :  { %2047 = vst [vmem:[%s3688_s8 + $0x30] sm:$0xff] %v2036_v26 }

</bundles_post_ra>
